<compile_context>
chip_gen: v5e
topology: v5e:2x2
jax: 0.10.0
libtpu: 0.0.40
codegen_flags: <defaults>
</compile_context>

<pallas_src>
import functools

import numpy as np
import jax
import jax.numpy as jnp
from jax import lax
from jax.experimental import pallas as pl
from jax.experimental.pallas import tpu as pltpu

EPS = 1e-5


# ----------------------------------------------------------------------------
# static helpers (plain numpy, evaluated at trace/setup time)
# ----------------------------------------------------------------------------
def _interp_matrix(out_size, in_size):
    """Row-interpolation matrix for bilinear resize with align_corners=True."""
    m = np.zeros((out_size, in_size), dtype=np.float32)
    if out_size == 1 or in_size == 1:
        m[:, 0] = 1.0
        return m
    scale = (in_size - 1) / (out_size - 1)
    for o in range(out_size):
        s = o * scale
        i0 = min(int(np.floor(s)), in_size - 1)
        i1 = min(i0 + 1, in_size - 1)
        frac = s - i0
        m[o, i0] += 1.0 - frac
        m[o, i1] += frac
    return m


def _shift_masks(h, w):
    """(9, h*w) validity masks for the 3x3 neighbourhood taps on the flat spatial axis."""
    yy, xx = np.meshgrid(np.arange(h), np.arange(w), indexing="ij")
    yy = yy.reshape(-1)
    xx = xx.reshape(-1)
    rows = []
    for dy in (-1, 0, 1):
        for dx in (-1, 0, 1):
            ok = (yy + dy >= 0) & (yy + dy < h) & (xx + dx >= 0) & (xx + dx < w)
            rows.append(ok.astype(np.float32))
    return np.stack(rows, axis=0)


def _batch_dim_semantics():
    """CORE_PARALLEL on v7x (2 TCs/chip), plain 'parallel' elsewhere."""
    try:
        kind = jax.devices()[0].device_kind.lower()
    except Exception:  # pragma: no cover
        kind = ""
    if "v7" in kind or "tpu7" in kind.replace(" ", ""):
        return (pltpu.CORE_PARALLEL,)
    return ("parallel",)


# ----------------------------------------------------------------------------
# in-kernel building blocks
# ----------------------------------------------------------------------------
def _im2col(x, masks, offs, hw, tap_dtype):
    """Fused (9*C, HW) im2col patch matrix from a channel-major (C, HW) tile.

    The neighbour at flat offset +off is a circular lane rotation (pltpu.roll, XLU) by
    (-off) mod HW; out-of-image positions are zeroed by the precomputed boundary masks.
    Roll/mask stay f32 (v5e has no bf16 VALU); taps are cast to `tap_dtype` before the
    sublane-aligned concat.
    """
    parts = []
    for k, off in enumerate(offs):
        if off == 0:
            t = x
        else:
            t = pltpu.roll(x, shift=(-off) % hw, axis=1) * masks[k:k + 1, :]
        parts.append(t.astype(tap_dtype))
    return jnp.concatenate(parts, axis=0)


def _group_stats(col, ngroups, cg, inv):
    """Mix a per-channel (C, 1) sum column into per-group means broadcast back to (C, 1)."""
    parts = []
    for g in range(ngroups):
        gsum = jnp.sum(col[g * cg:(g + 1) * cg, :], keepdims=True) * inv   # (1, 1)
        parts.append(jnp.broadcast_to(gsum, (cg, 1)))
    if ngroups == 1:
        return parts[0]
    return jnp.concatenate(parts, axis=0)


def _gn_relu(a, gamma, beta, ngroups):
    """GroupNorm (two-pass biased var, eps=1e-5) + ReLU on a channel-major (C, HW) tile.

    MXU-free: lane (XLU) reduce -> tiny per-group sublane mix -> VPU normalize.
    """
    c, hw = a.shape
    cg = c // ngroups
    inv = 1.0 / float(cg * hw)
    s = jnp.sum(a, axis=1, keepdims=True)                       # (C, 1) lane reduce
    mean = _group_stats(s, ngroups, cg, inv)                    # (C, 1) group means
    ac = a - mean
    q = jnp.sum(ac * ac, axis=1, keepdims=True)                 # (C, 1)
    var = _group_stats(q, ngroups, cg, inv)                     # (C, 1) group variances
    return jnp.maximum(ac * lax.rsqrt(var + EPS) * gamma + beta, 0.0)


# ----------------------------------------------------------------------------
# the Pallas kernel: full MotionRefiner forward for one sample (channel-major layout)
# ----------------------------------------------------------------------------
def _motion_refiner_kernel(offs, ct, cs, ctp, groups, hw,
                           trans_ref, skip_ref, kT_ref, mask_ref,
                           ws1_ref, w22_ref, w3_ref, vec_ref,
                           out_ref):
    x = trans_ref[0]                    # (ctp, Hi*Wi) f32, rows ct..ctp-1 are zero
    skip = skip_ref[0]                  # (cs, HW)     f32
    masks = mask_ref[...]               # (9, HW)      f32
    V = vec_ref[...]                    # (max(2cs,8), 9) f32 packed bias/gamma/beta

    # bilinear upsample (align_corners=True): one true-f32 MXU matmul, lane-dense result.
    up = jnp.dot(x, kT_ref[...], preferred_element_type=jnp.float32,
                 precision=lax.Precision.HIGHEST)                         # (ctp, HW)

    # shared im2col patches for the fused conv1/conv21 (input = [up(8-pad), skip]).
    x_cat = jnp.concatenate([up, skip], axis=0)                           # (ctp+cs, HW)
    p12 = _im2col(x_cat, masks, offs, hw, jnp.bfloat16)                   # (9*(ctp+cs), HW)

    # fused conv1 + conv21: one stacked matmul, one block-diagonal GroupNorm.
    a_s1 = (jnp.dot(ws1_ref[...], p12, preferred_element_type=jnp.float32)
            + V[:2 * cs, 0:1])                                            # (2cs, HW)
    y_s1 = _gn_relu(a_s1, V[:2 * cs, 1:2], V[:2 * cs, 2:3], 2 * groups)
    o1 = y_s1[:cs]                                                        # conv1 output
    o21 = y_s1[cs:]                                                       # conv21 output

    # conv22 (3x3): f32-aligned 8-row taps, cast once to bf16 after the concat.
    p22 = _im2col(o21, masks, offs, hw, jnp.float32).astype(jnp.bfloat16)  # (9*cs, HW)
    a22 = (jnp.dot(w22_ref[...], p22, preferred_element_type=jnp.float32)
           + V[:cs, 3:4])
    o2 = _gn_relu(a22, V[:cs, 4:5], V[:cs, 5:6], groups)                  # (cs, HW)

    # conv3 (1x1) on channel-concat [o1, o2], GN + ReLU, then the residual add.
    cat_o = jnp.concatenate([o1, o2], axis=0).astype(jnp.bfloat16)        # (2cs, HW)
    a3 = (jnp.dot(w3_ref[...], cat_o, preferred_element_type=jnp.float32)
          + V[:ct, 6:7])
    y3 = _gn_relu(a3, V[:ct, 7:8], V[:ct, 8:9], groups)                   # (ct, HW)

    out_ref[0] = up[:ct] + y3


# ----------------------------------------------------------------------------
# wrapper (NCHW in / NCHW out, like the PyTorch module)
# ----------------------------------------------------------------------------
def motion_refiner_pallas(trans_nchw, skip_nchw, params, groups):
    n, ct, hi, wi = trans_nchw.shape
    _, cs, ho, wo = skip_nchw.shape
    hw = ho * wo
    hiwi = hi * wi
    assert cs % 8 == 0, "skip_channel must be a multiple of 8 for this packing"
    assert cs % groups == 0 and ct % groups == 0
    ctp = ((ct + 7) // 8) * 8            # sublane-aligned channel count for `up`

    # lane-dense channel-major inputs (reshape only; `trans` zero-padded to ctp channels).
    trans = trans_nchw.reshape(n, ct, hiwi).astype(jnp.float32)
    if ctp != ct:
        trans = jnp.concatenate(
            [trans, jnp.zeros((n, ctp - ct, hiwi), jnp.float32)], axis=1)
    skip = skip_nchw.reshape(n, cs, hw).astype(jnp.float32)

    # host-side constants
    kT = jnp.asarray(np.kron(_interp_matrix(ho, hi), _interp_matrix(wo, wi)).T)  # (HiWi, HW)
    masks = jnp.asarray(_shift_masks(ho, wo))                                    # (9, HW)
    offs = tuple(dy * wo + dx for dy in (-1, 0, 1) for dx in (-1, 0, 1))

    (w1, b1, g1, be1, w21, b21, g21, be21,
     w22, b22, g22, be22, w3, b3, g3, be3) = params

    def pack3x3(w):
        # HWIO (3,3,ct+cs,cout) -> (cout, 9*(ctp+cs)) bf16, tap-major, zero columns for
        # the sublane-pad channels of `up`.
        kh, kw, cin, cout = w.shape
        wt = w.reshape(kh * kw, cin, cout)
        wp = jnp.concatenate(
            [wt[:, :ct], jnp.zeros((kh * kw, ctp - ct, cout), w.dtype), wt[:, ct:]],
            axis=1)
        return wp.reshape(kh * kw * (ctp + cs), cout).T.astype(jnp.bfloat16)

    w_s1 = jnp.concatenate([pack3x3(w1), pack3x3(w21)], axis=0)    # (2cs, 9*(ctp+cs))
    w22p = w22.reshape(9 * cs, cs).T.astype(jnp.bfloat16)          # (cs, 9*cs)
    w3p = w3.T.astype(jnp.bfloat16)                                # (ct, 2*cs)

    # pack all tiny per-channel vectors into ONE lane-dense f32 array (one DMA/buffer).
    vrows = max(2 * cs, 8)

    def pcol(v):
        v = v.reshape(-1).astype(jnp.float32)
        return jnp.pad(v, (0, vrows - v.shape[0]))

    vecs = jnp.stack([
        pcol(jnp.concatenate([b1.reshape(-1), b21.reshape(-1)])),
        pcol(jnp.concatenate([g1.reshape(-1), g21.reshape(-1)])),
        pcol(jnp.concatenate([be1.reshape(-1), be21.reshape(-1)])),
        pcol(b22), pcol(g22), pcol(be22),
        pcol(b3), pcol(g3), pcol(be3),
    ], axis=1)                                                     # (vrows, 9)

    const_inputs = [kT, masks, w_s1, w22p, w3p, vecs]

    def cmap(nd):
        return lambda b: (0,) * nd

    const_specs = [
        pl.BlockSpec(a.shape, cmap(a.ndim), pipeline_mode=pl.Buffered(1))
        for a in const_inputs
    ]
    in_specs = [
        pl.BlockSpec((1, ctp, hiwi), lambda b: (b, 0, 0)),
        pl.BlockSpec((1, cs, hw), lambda b: (b, 0, 0)),
    ] + const_specs
    out_specs = pl.BlockSpec((1, ct, hw), lambda b: (b, 0, 0))

    kernel = functools.partial(_motion_refiner_kernel, offs, ct, cs, ctp, groups, hw)
    out = pl.pallas_call(
        kernel,
        out_shape=jax.ShapeDtypeStruct((n, ct, hw), jnp.float32),
        grid=(n,),
        in_specs=in_specs,
        out_specs=out_specs,
        compiler_params=pltpu.CompilerParams(
            dimension_semantics=_batch_dim_semantics(),
            vmem_limit_bytes=32 * 1024 * 1024),
    )(trans, skip, *const_inputs)

    return out.reshape(n, ct, ho, wo)            # back to NCHW


# ----------------------------------------------------------------------------
# deterministic parameter init (shapes implied by the module __init__)
# ----------------------------------------------------------------------------
def _init_conv(key, k, cin, cout):
    k1, k2, k3, k4 = jax.random.split(key, 4)
    w = 0.1 * jax.random.normal(k1, (k, k, cin, cout), jnp.float32)   # HWIO
    b = 0.05 * jax.random.normal(k2, (1, cout), jnp.float32)
    g = 1.0 + 0.1 * jax.random.normal(k3, (1, cout), jnp.float32)     # GN gamma
    be = 0.05 * jax.random.normal(k4, (1, cout), jnp.float32)         # GN beta
    return w, b, g, be


def init_params(key, ct, cs):
    keys = jax.random.split(key, 4)
    w1, b1, g1, be1 = _init_conv(keys[0], 3, ct + cs, cs)
    w21, b21, g21, be21 = _init_conv(keys[1], 3, ct + cs, cs)
    w22, b22, g22, be22 = _init_conv(keys[2], 3, cs, cs)
    w3, b3, g3, be3 = _init_conv(keys[3], 1, 2 * cs, ct)
    w3 = w3.reshape(2 * cs, ct)                                       # 1x1 conv as matmul
    return (w1, b1, g1, be1, w21, b21, g21, be21,
            w22, b22, g22, be22, w3, b3, g3, be3)


# ----------------------------------------------------------------------------
# pure-JAX f32 reference (for correctness check)
# ----------------------------------------------------------------------------
def ref_forward(trans_nchw, skip_nchw, params, groups):
    (w1, b1, g1, be1, w21, b21, g21, be21,
     w22, b22, g22, be22, w3, b3, g3, be3) = params
    trans = jnp.transpose(trans_nchw, (0, 2, 3, 1))
    skip = jnp.transpose(skip_nchw, (0, 2, 3, 1))
    n, hi, wi, ct = trans.shape
    _, ho, wo, cs = skip.shape
    rh = jnp.asarray(_interp_matrix(ho, hi))
    rw = jnp.asarray(_interp_matrix(wo, wi))
    up = jnp.einsum('oh,nhwc->nowc', rh, trans)
    up = jnp.einsum('pw,nowc->nopc', rw, up)

    def cgr(x, w, b, g, be, k):
        pad = (k - 1) // 2
        y = lax.conv_general_dilated(
            x, w, (1, 1), ((pad, pad), (pad, pad)),
            dimension_numbers=('NHWC', 'HWIO', 'NHWC')) + b
        nn_, hh, ww, cc = y.shape
        cg = cc // groups
        yr = y.reshape(nn_, hh, ww, groups, cg)
        mu = yr.mean(axis=(1, 2, 4), keepdims=True)
        var = ((yr - mu) ** 2).mean(axis=(1, 2, 4), keepdims=True)
        yn = ((yr - mu) / jnp.sqrt(var + EPS)).reshape(nn_, hh, ww, cc)
        return jnp.maximum(yn * g + be, 0.0)

    x = jnp.concatenate([up, skip], axis=-1)
    o1 = cgr(x, w1, b1, g1, be1, 3)
    o2 = cgr(cgr(x, w21, b21, g21, be21, 3), w22, b22, g22, be22, 3)
    cat = jnp.concatenate([o1, o2], axis=-1)
    y = cgr(cat, w3.reshape(1, 1, 2 * cs, ct), b3, g3, be3, 1)
    out = up + y
    return jnp.transpose(out, (0, 3, 1, 2))


# ----------------------------------------------------------------------------
if __name__ == "__main__":
    trans_channel, skip_channel, group_norm = 4, 8, 2
    batch = 2
    hi = wi = 8          # low-res trans spatial
    ho = wo = 16         # trans_skip spatial (upsample target)

    key = jax.random.PRNGKey(0)
    k_t, k_s, k_p = jax.random.split(key, 3)
    trans = jax.random.normal(k_t, (batch, trans_channel, hi, wi), jnp.float32)
    trans_skip = jax.random.normal(k_s, (batch, skip_channel, ho, wo), jnp.float32)
    params = init_params(k_p, trans_channel, skip_channel)

    run = jax.jit(functools.partial(motion_refiner_pallas, groups=group_norm))
    out = jax.block_until_ready(run(trans, trans_skip, params))

    ref = ref_forward(trans, trans_skip, params, group_norm)
    err = float(jnp.max(jnp.abs(out - ref)))
    assert out.shape == (batch, trans_channel, ho, wo), out.shape
    # bf16 MXU operands for the conv matmuls (f32 GN stats / upsample / residual) vs a
    # pure-f32 reference: relaxed absolute tolerance (measured error is far below this).
    assert err < 5e-2, f"max abs err vs reference: {err}"
    print("KERNEL_OK")
</pallas_src>

<mosaic_0001>
module attributes {stable_mosaic.version = 11 : i64} {
  func.func @_motion_refiner_kernel(%arg0: i32, %arg1: memref<1x8x64xf32, #tpu.memory_space<vmem>>, %arg2: memref<1x8x256xf32, #tpu.memory_space<vmem>>, %arg3: memref<64x256xf32, #tpu.memory_space<vmem>>, %arg4: memref<9x256xf32, #tpu.memory_space<vmem>>, %arg5: memref<16x144xbf16, #tpu.memory_space<vmem>>, %arg6: memref<8x72xbf16, #tpu.memory_space<vmem>>, %arg7: memref<4x16xbf16, #tpu.memory_space<vmem>>, %arg8: memref<16x9xf32, #tpu.memory_space<vmem>>, %arg9: memref<1x4x256xf32, #tpu.memory_space<vmem>>) attributes {dimension_semantics = [#tpu.dimension_semantics<parallel>], iteration_bounds = array<i64: 2>, scalar_prefetch = 0 : i64, scratch_operands = 0 : i64, tpu.core_type = #tpu.core_type<tc>, window_params = [{transform_indices = @transform_0, window_bounds = array<i64: 1, 8, 64>}, {transform_indices = @transform_1, window_bounds = array<i64: 1, 8, 256>}, {pipeline_mode = #tpu.pipeline_mode<synchronous>, transform_indices = @transform_2, window_bounds = array<i64: 64, 256>}, {pipeline_mode = #tpu.pipeline_mode<synchronous>, transform_indices = @transform_3, window_bounds = array<i64: 9, 256>}, {pipeline_mode = #tpu.pipeline_mode<synchronous>, transform_indices = @transform_4, window_bounds = array<i64: 16, 144>}, {pipeline_mode = #tpu.pipeline_mode<synchronous>, transform_indices = @transform_5, window_bounds = array<i64: 8, 72>}, {pipeline_mode = #tpu.pipeline_mode<synchronous>, transform_indices = @transform_6, window_bounds = array<i64: 4, 16>}, {pipeline_mode = #tpu.pipeline_mode<synchronous>, transform_indices = @transform_7, window_bounds = array<i64: 16, 9>}, {transform_indices = @transform_8, window_bounds = array<i64: 1, 4, 256>}]} {
    %c0 = arith.constant 0 : index
    %c0_0 = arith.constant 0 : index
    %c0_1 = arith.constant 0 : index
    %0 = vector.load %arg1[%c0, %c0_0, %c0_1] : memref<1x8x64xf32, #tpu.memory_space<vmem>>, vector<1x8x64xf32>
    %1 = vector.shape_cast %0 : vector<1x8x64xf32> to vector<8x64xf32>
    %c0_2 = arith.constant 0 : index
    %c0_3 = arith.constant 0 : index
    %c0_4 = arith.constant 0 : index
    %2 = vector.load %arg2[%c0_2, %c0_3, %c0_4] : memref<1x8x256xf32, #tpu.memory_space<vmem>>, vector<1x8x256xf32>
    %3 = vector.shape_cast %2 : vector<1x8x256xf32> to vector<8x256xf32>
    %c0_5 = arith.constant 0 : index
    %c0_6 = arith.constant 0 : index
    %4 = vector.load %arg4[%c0_5, %c0_6] : memref<9x256xf32, #tpu.memory_space<vmem>>, vector<9x256xf32>
    %c0_7 = arith.constant 0 : index
    %c0_8 = arith.constant 0 : index
    %5 = vector.load %arg8[%c0_7, %c0_8] : memref<16x9xf32, #tpu.memory_space<vmem>>, vector<16x9xf32>
    %c0_9 = arith.constant 0 : index
    %c0_10 = arith.constant 0 : index
    %6 = vector.load %arg3[%c0_9, %c0_10] : memref<64x256xf32, #tpu.memory_space<vmem>>, vector<64x256xf32>
    %cst = arith.constant dense<0.000000e+00> : vector<8x256xf32>
    %7 = tpu.matmul %1, %6, %cst {dimension_numbers = #tpu.dot_dimension_numbers<[1], [0], [0], [1], [0, 0, 1, 1], [], []>, precision = #tpu.contract_precision<fp32>} : vector<8x64xf32>, vector<64x256xf32>, vector<8x256xf32> -> vector<8x256xf32>
    %8 = tpu.concatenate %7, %3 in 0 : vector<8x256xf32>, vector<8x256xf32> -> vector<16x256xf32>
    %c17_i32 = arith.constant 17 : i32
    %9 = tpu.dynamic_rotate %8 by %c17_i32 dim 1 : vector<16x256xf32>, i32 -> vector<16x256xf32>
    %10 = vector.extract_strided_slice %4 {offsets = [0, 0], sizes = [1, 256], strides = [1, 1]} : vector<9x256xf32> to vector<1x256xf32>
    %11 = vector.broadcast %10 : vector<1x256xf32> to vector<16x256xf32>
    %12 = arith.mulf %9, %11 : vector<16x256xf32>
    %13 = arith.truncf %12 : vector<16x256xf32> to vector<16x256xbf16>
    %c16_i32 = arith.constant 16 : i32
    %14 = tpu.dynamic_rotate %8 by %c16_i32 dim 1 : vector<16x256xf32>, i32 -> vector<16x256xf32>
    %15 = vector.extract_strided_slice %4 {offsets = [1, 0], sizes = [1, 256], strides = [1, 1]} : vector<9x256xf32> to vector<1x256xf32>
    %16 = vector.broadcast %15 : vector<1x256xf32> to vector<16x256xf32>
    %17 = arith.mulf %14, %16 : vector<16x256xf32>
    %18 = arith.truncf %17 : vector<16x256xf32> to vector<16x256xbf16>
    %c15_i32 = arith.constant 15 : i32
    %19 = tpu.dynamic_rotate %8 by %c15_i32 dim 1 : vector<16x256xf32>, i32 -> vector<16x256xf32>
    %20 = vector.extract_strided_slice %4 {offsets = [2, 0], sizes = [1, 256], strides = [1, 1]} : vector<9x256xf32> to vector<1x256xf32>
    %21 = vector.broadcast %20 : vector<1x256xf32> to vector<16x256xf32>
    %22 = arith.mulf %19, %21 : vector<16x256xf32>
    %23 = arith.truncf %22 : vector<16x256xf32> to vector<16x256xbf16>
    %c1_i32 = arith.constant 1 : i32
    %24 = tpu.dynamic_rotate %8 by %c1_i32 dim 1 : vector<16x256xf32>, i32 -> vector<16x256xf32>
    %25 = vector.extract_strided_slice %4 {offsets = [3, 0], sizes = [1, 256], strides = [1, 1]} : vector<9x256xf32> to vector<1x256xf32>
    %26 = vector.broadcast %25 : vector<1x256xf32> to vector<16x256xf32>
    %27 = arith.mulf %24, %26 : vector<16x256xf32>
    %28 = arith.truncf %27 : vector<16x256xf32> to vector<16x256xbf16>
    %29 = arith.truncf %8 : vector<16x256xf32> to vector<16x256xbf16>
    %c255_i32 = arith.constant 255 : i32
    %30 = tpu.dynamic_rotate %8 by %c255_i32 dim 1 : vector<16x256xf32>, i32 -> vector<16x256xf32>
    %31 = vector.extract_strided_slice %4 {offsets = [5, 0], sizes = [1, 256], strides = [1, 1]} : vector<9x256xf32> to vector<1x256xf32>
    %32 = vector.broadcast %31 : vector<1x256xf32> to vector<16x256xf32>
    %33 = arith.mulf %30, %32 : vector<16x256xf32>
    %34 = arith.truncf %33 : vector<16x256xf32> to vector<16x256xbf16>
    %c241_i32 = arith.constant 241 : i32
    %35 = tpu.dynamic_rotate %8 by %c241_i32 dim 1 : vector<16x256xf32>, i32 -> vector<16x256xf32>
    %36 = vector.extract_strided_slice %4 {offsets = [6, 0], sizes = [1, 256], strides = [1, 1]} : vector<9x256xf32> to vector<1x256xf32>
    %37 = vector.broadcast %36 : vector<1x256xf32> to vector<16x256xf32>
    %38 = arith.mulf %35, %37 : vector<16x256xf32>
    %39 = arith.truncf %38 : vector<16x256xf32> to vector<16x256xbf16>
    %c240_i32 = arith.constant 240 : i32
    %40 = tpu.dynamic_rotate %8 by %c240_i32 dim 1 : vector<16x256xf32>, i32 -> vector<16x256xf32>
    %41 = vector.extract_strided_slice %4 {offsets = [7, 0], sizes = [1, 256], strides = [1, 1]} : vector<9x256xf32> to vector<1x256xf32>
    %42 = vector.broadcast %41 : vector<1x256xf32> to vector<16x256xf32>
    %43 = arith.mulf %40, %42 : vector<16x256xf32>
    %44 = arith.truncf %43 : vector<16x256xf32> to vector<16x256xbf16>
    %c239_i32 = arith.constant 239 : i32
    %45 = tpu.dynamic_rotate %8 by %c239_i32 dim 1 : vector<16x256xf32>, i32 -> vector<16x256xf32>
    %46 = vector.extract_strided_slice %4 {offsets = [8, 0], sizes = [1, 256], strides = [1, 1]} : vector<9x256xf32> to vector<1x256xf32>
    %47 = vector.broadcast %46 : vector<1x256xf32> to vector<16x256xf32>
    %48 = arith.mulf %45, %47 : vector<16x256xf32>
    %49 = arith.truncf %48 : vector<16x256xf32> to vector<16x256xbf16>
    %50 = tpu.concatenate %13, %18, %23, %28, %29, %34, %39, %44, %49 in 0 : vector<16x256xbf16>, vector<16x256xbf16>, vector<16x256xbf16>, vector<16x256xbf16>, vector<16x256xbf16>, vector<16x256xbf16>, vector<16x256xbf16>, vector<16x256xbf16>, vector<16x256xbf16> -> vector<144x256xbf16>
    %c0_11 = arith.constant 0 : index
    %c0_12 = arith.constant 0 : index
    %51 = vector.load %arg5[%c0_11, %c0_12] : memref<16x144xbf16, #tpu.memory_space<vmem>>, vector<16x144xbf16>
    %cst_13 = arith.constant dense<0.000000e+00> : vector<16x256xf32>
    %52 = tpu.matmul %51, %50, %cst_13 {dimension_numbers = #tpu.dot_dimension_numbers<[1], [0], [0], [1], [0, 0, 1, 1], [], []>} : vector<16x144xbf16>, vector<144x256xbf16>, vector<16x256xf32> -> vector<16x256xf32>
    %53 = vector.extract_strided_slice %5 {offsets = [0, 0], sizes = [16, 1], strides = [1, 1]} : vector<16x9xf32> to vector<16x1xf32>
    %54 = vector.broadcast %53 : vector<16x1xf32> to vector<16x256xf32>
    %55 = arith.addf %52, %54 : vector<16x256xf32>
    %56 = vector.extract_strided_slice %5 {offsets = [0, 1], sizes = [16, 1], strides = [1, 1]} : vector<16x9xf32> to vector<16x1xf32>
    %57 = vector.extract_strided_slice %5 {offsets = [0, 2], sizes = [16, 1], strides = [1, 1]} : vector<16x9xf32> to vector<16x1xf32>
    %cst_14 = arith.constant dense<0.000000e+00> : vector<16xf32>
    %58 = vector.multi_reduction <add>, %55, %cst_14 [1] : vector<16x256xf32> to vector<16xf32>
    %59 = vector.shape_cast %58 : vector<16xf32> to vector<16x1xf32>
    %60 = vector.extract_strided_slice %59 {offsets = [0, 0], sizes = [4, 1], strides = [1, 1]} : vector<16x1xf32> to vector<4x1xf32>
    %61 = vector.shape_cast %60 : vector<4x1xf32> to vector<1x4x1xf32>
    %cst_15 = arith.constant dense<0.000000e+00> : vector<1xf32>
    %62 = vector.multi_reduction <add>, %61, %cst_15 [1, 2] : vector<1x4x1xf32> to vector<1xf32>
    %63 = vector.shape_cast %62 : vector<1xf32> to vector<1x1x1xf32>
    %64 = vector.extract %63[0, 0, 0] : f32 from vector<1x1x1xf32>
    %65 = vector.broadcast %64 : f32 to vector<1x1xf32>
    %cst_16 = arith.constant 9.765625E-4 : f32
    %66 = vector.broadcast %cst_16 : f32 to vector<1x1xf32>
    %67 = arith.mulf %65, %66 : vector<1x1xf32>
    %68 = vector.shape_cast %67 : vector<1x1xf32> to vector<1x1xf32>
    %69 = vector.broadcast %68 : vector<1x1xf32> to vector<4x1xf32>
    %70 = vector.extract_strided_slice %59 {offsets = [4, 0], sizes = [4, 1], strides = [1, 1]} : vector<16x1xf32> to vector<4x1xf32>
    %71 = vector.shape_cast %70 : vector<4x1xf32> to vector<1x4x1xf32>
    %cst_17 = arith.constant dense<0.000000e+00> : vector<1xf32>
    %72 = vector.multi_reduction <add>, %71, %cst_17 [1, 2] : vector<1x4x1xf32> to vector<1xf32>
    %73 = vector.shape_cast %72 : vector<1xf32> to vector<1x1x1xf32>
    %74 = vector.extract %73[0, 0, 0] : f32 from vector<1x1x1xf32>
    %75 = vector.broadcast %74 : f32 to vector<1x1xf32>
    %cst_18 = arith.constant 9.765625E-4 : f32
    %76 = vector.broadcast %cst_18 : f32 to vector<1x1xf32>
    %77 = arith.mulf %75, %76 : vector<1x1xf32>
    %78 = vector.shape_cast %77 : vector<1x1xf32> to vector<1x1xf32>
    %79 = vector.broadcast %78 : vector<1x1xf32> to vector<4x1xf32>
    %80 = vector.extract_strided_slice %59 {offsets = [8, 0], sizes = [4, 1], strides = [1, 1]} : vector<16x1xf32> to vector<4x1xf32>
    %81 = vector.shape_cast %80 : vector<4x1xf32> to vector<1x4x1xf32>
    %cst_19 = arith.constant dense<0.000000e+00> : vector<1xf32>
    %82 = vector.multi_reduction <add>, %81, %cst_19 [1, 2] : vector<1x4x1xf32> to vector<1xf32>
    %83 = vector.shape_cast %82 : vector<1xf32> to vector<1x1x1xf32>
    %84 = vector.extract %83[0, 0, 0] : f32 from vector<1x1x1xf32>
    %85 = vector.broadcast %84 : f32 to vector<1x1xf32>
    %cst_20 = arith.constant 9.765625E-4 : f32
    %86 = vector.broadcast %cst_20 : f32 to vector<1x1xf32>
    %87 = arith.mulf %85, %86 : vector<1x1xf32>
    %88 = vector.shape_cast %87 : vector<1x1xf32> to vector<1x1xf32>
    %89 = vector.broadcast %88 : vector<1x1xf32> to vector<4x1xf32>
    %90 = vector.extract_strided_slice %59 {offsets = [12, 0], sizes = [4, 1], strides = [1, 1]} : vector<16x1xf32> to vector<4x1xf32>
    %91 = vector.shape_cast %90 : vector<4x1xf32> to vector<1x4x1xf32>
    %cst_21 = arith.constant dense<0.000000e+00> : vector<1xf32>
    %92 = vector.multi_reduction <add>, %91, %cst_21 [1, 2] : vector<1x4x1xf32> to vector<1xf32>
    %93 = vector.shape_cast %92 : vector<1xf32> to vector<1x1x1xf32>
    %94 = vector.extract %93[0, 0, 0] : f32 from vector<1x1x1xf32>
    %95 = vector.broadcast %94 : f32 to vector<1x1xf32>
    %cst_22 = arith.constant 9.765625E-4 : f32
    %96 = vector.broadcast %cst_22 : f32 to vector<1x1xf32>
    %97 = arith.mulf %95, %96 : vector<1x1xf32>
    %98 = vector.shape_cast %97 : vector<1x1xf32> to vector<1x1xf32>
    %99 = vector.broadcast %98 : vector<1x1xf32> to vector<4x1xf32>
    %100 = tpu.concatenate %69, %79, %89, %99 in 0 : vector<4x1xf32>, vector<4x1xf32>, vector<4x1xf32>, vector<4x1xf32> -> vector<16x1xf32>
    %101 = vector.broadcast %100 : vector<16x1xf32> to vector<16x256xf32>
    %102 = arith.subf %55, %101 : vector<16x256xf32>
    %103 = arith.mulf %102, %102 : vector<16x256xf32>
    %cst_23 = arith.constant dense<0.000000e+00> : vector<16xf32>
    %104 = vector.multi_reduction <add>, %103, %cst_23 [1] : vector<16x256xf32> to vector<16xf32>
    %105 = vector.shape_cast %104 : vector<16xf32> to vector<16x1xf32>
    %106 = vector.extract_strided_slice %105 {offsets = [0, 0], sizes = [4, 1], strides = [1, 1]} : vector<16x1xf32> to vector<4x1xf32>
    %107 = vector.shape_cast %106 : vector<4x1xf32> to vector<1x4x1xf32>
    %cst_24 = arith.constant dense<0.000000e+00> : vector<1xf32>
    %108 = vector.multi_reduction <add>, %107, %cst_24 [1, 2] : vector<1x4x1xf32> to vector<1xf32>
    %109 = vector.shape_cast %108 : vector<1xf32> to vector<1x1x1xf32>
    %110 = vector.extract %109[0, 0, 0] : f32 from vector<1x1x1xf32>
    %111 = vector.broadcast %110 : f32 to vector<1x1xf32>
    %cst_25 = arith.constant 9.765625E-4 : f32
    %112 = vector.broadcast %cst_25 : f32 to vector<1x1xf32>
    %113 = arith.mulf %111, %112 : vector<1x1xf32>
    %114 = vector.shape_cast %113 : vector<1x1xf32> to vector<1x1xf32>
    %115 = vector.broadcast %114 : vector<1x1xf32> to vector<4x1xf32>
    %116 = vector.extract_strided_slice %105 {offsets = [4, 0], sizes = [4, 1], strides = [1, 1]} : vector<16x1xf32> to vector<4x1xf32>
    %117 = vector.shape_cast %116 : vector<4x1xf32> to vector<1x4x1xf32>
    %cst_26 = arith.constant dense<0.000000e+00> : vector<1xf32>
    %118 = vector.multi_reduction <add>, %117, %cst_26 [1, 2] : vector<1x4x1xf32> to vector<1xf32>
    %119 = vector.shape_cast %118 : vector<1xf32> to vector<1x1x1xf32>
    %120 = vector.extract %119[0, 0, 0] : f32 from vector<1x1x1xf32>
    %121 = vector.broadcast %120 : f32 to vector<1x1xf32>
    %cst_27 = arith.constant 9.765625E-4 : f32
    %122 = vector.broadcast %cst_27 : f32 to vector<1x1xf32>
    %123 = arith.mulf %121, %122 : vector<1x1xf32>
    %124 = vector.shape_cast %123 : vector<1x1xf32> to vector<1x1xf32>
    %125 = vector.broadcast %124 : vector<1x1xf32> to vector<4x1xf32>
    %126 = vector.extract_strided_slice %105 {offsets = [8, 0], sizes = [4, 1], strides = [1, 1]} : vector<16x1xf32> to vector<4x1xf32>
    %127 = vector.shape_cast %126 : vector<4x1xf32> to vector<1x4x1xf32>
    %cst_28 = arith.constant dense<0.000000e+00> : vector<1xf32>
    %128 = vector.multi_reduction <add>, %127, %cst_28 [1, 2] : vector<1x4x1xf32> to vector<1xf32>
    %129 = vector.shape_cast %128 : vector<1xf32> to vector<1x1x1xf32>
    %130 = vector.extract %129[0, 0, 0] : f32 from vector<1x1x1xf32>
    %131 = vector.broadcast %130 : f32 to vector<1x1xf32>
    %cst_29 = arith.constant 9.765625E-4 : f32
    %132 = vector.broadcast %cst_29 : f32 to vector<1x1xf32>
    %133 = arith.mulf %131, %132 : vector<1x1xf32>
    %134 = vector.shape_cast %133 : vector<1x1xf32> to vector<1x1xf32>
    %135 = vector.broadcast %134 : vector<1x1xf32> to vector<4x1xf32>
    %136 = vector.extract_strided_slice %105 {offsets = [12, 0], sizes = [4, 1], strides = [1, 1]} : vector<16x1xf32> to vector<4x1xf32>
    %137 = vector.shape_cast %136 : vector<4x1xf32> to vector<1x4x1xf32>
    %cst_30 = arith.constant dense<0.000000e+00> : vector<1xf32>
    %138 = vector.multi_reduction <add>, %137, %cst_30 [1, 2] : vector<1x4x1xf32> to vector<1xf32>
    %139 = vector.shape_cast %138 : vector<1xf32> to vector<1x1x1xf32>
    %140 = vector.extract %139[0, 0, 0] : f32 from vector<1x1x1xf32>
    %141 = vector.broadcast %140 : f32 to vector<1x1xf32>
    %cst_31 = arith.constant 9.765625E-4 : f32
    %142 = vector.broadcast %cst_31 : f32 to vector<1x1xf32>
    %143 = arith.mulf %141, %142 : vector<1x1xf32>
    %144 = vector.shape_cast %143 : vector<1x1xf32> to vector<1x1xf32>
    %145 = vector.broadcast %144 : vector<1x1xf32> to vector<4x1xf32>
    %146 = tpu.concatenate %115, %125, %135, %145 in 0 : vector<4x1xf32>, vector<4x1xf32>, vector<4x1xf32>, vector<4x1xf32> -> vector<16x1xf32>
    %cst_32 = arith.constant 9.99999974E-6 : f32
    %147 = vector.broadcast %cst_32 : f32 to vector<16x1xf32>
    %148 = arith.addf %146, %147 : vector<16x1xf32>
    %149 = math.rsqrt %148 : vector<16x1xf32>
    %150 = vector.broadcast %149 : vector<16x1xf32> to vector<16x256xf32>
    %151 = arith.mulf %102, %150 : vector<16x256xf32>
    %152 = vector.broadcast %56 : vector<16x1xf32> to vector<16x256xf32>
    %153 = arith.mulf %151, %152 : vector<16x256xf32>
    %154 = vector.broadcast %57 : vector<16x1xf32> to vector<16x256xf32>
    %155 = arith.addf %153, %154 : vector<16x256xf32>
    %cst_33 = arith.constant 0.000000e+00 : f32
    %156 = vector.broadcast %cst_33 : f32 to vector<16x256xf32>
    %157 = arith.maximumf %155, %156 : vector<16x256xf32>
    %158 = vector.extract_strided_slice %157 {offsets = [0, 0], sizes = [8, 256], strides = [1, 1]} : vector<16x256xf32> to vector<8x256xf32>
    %159 = vector.extract_strided_slice %157 {offsets = [8, 0], sizes = [8, 256], strides = [1, 1]} : vector<16x256xf32> to vector<8x256xf32>
    %c17_i32_34 = arith.constant 17 : i32
    %160 = tpu.dynamic_rotate %159 by %c17_i32_34 dim 1 : vector<8x256xf32>, i32 -> vector<8x256xf32>
    %161 = vector.extract_strided_slice %4 {offsets = [0, 0], sizes = [1, 256], strides = [1, 1]} : vector<9x256xf32> to vector<1x256xf32>
    %162 = vector.broadcast %161 : vector<1x256xf32> to vector<8x256xf32>
    %163 = arith.mulf %160, %162 : vector<8x256xf32>
    %c16_i32_35 = arith.constant 16 : i32
    %164 = tpu.dynamic_rotate %159 by %c16_i32_35 dim 1 : vector<8x256xf32>, i32 -> vector<8x256xf32>
    %165 = vector.extract_strided_slice %4 {offsets = [1, 0], sizes = [1, 256], strides = [1, 1]} : vector<9x256xf32> to vector<1x256xf32>
    %166 = vector.broadcast %165 : vector<1x256xf32> to vector<8x256xf32>
    %167 = arith.mulf %164, %166 : vector<8x256xf32>
    %c15_i32_36 = arith.constant 15 : i32
    %168 = tpu.dynamic_rotate %159 by %c15_i32_36 dim 1 : vector<8x256xf32>, i32 -> vector<8x256xf32>
    %169 = vector.extract_strided_slice %4 {offsets = [2, 0], sizes = [1, 256], strides = [1, 1]} : vector<9x256xf32> to vector<1x256xf32>
    %170 = vector.broadcast %169 : vector<1x256xf32> to vector<8x256xf32>
    %171 = arith.mulf %168, %170 : vector<8x256xf32>
    %c1_i32_37 = arith.constant 1 : i32
    %172 = tpu.dynamic_rotate %159 by %c1_i32_37 dim 1 : vector<8x256xf32>, i32 -> vector<8x256xf32>
    %173 = vector.extract_strided_slice %4 {offsets = [3, 0], sizes = [1, 256], strides = [1, 1]} : vector<9x256xf32> to vector<1x256xf32>
    %174 = vector.broadcast %173 : vector<1x256xf32> to vector<8x256xf32>
    %175 = arith.mulf %172, %174 : vector<8x256xf32>
    %c255_i32_38 = arith.constant 255 : i32
    %176 = tpu.dynamic_rotate %159 by %c255_i32_38 dim 1 : vector<8x256xf32>, i32 -> vector<8x256xf32>
    %177 = vector.extract_strided_slice %4 {offsets = [5, 0], sizes = [1, 256], strides = [1, 1]} : vector<9x256xf32> to vector<1x256xf32>
    %178 = vector.broadcast %177 : vector<1x256xf32> to vector<8x256xf32>
    %179 = arith.mulf %176, %178 : vector<8x256xf32>
    %c241_i32_39 = arith.constant 241 : i32
    %180 = tpu.dynamic_rotate %159 by %c241_i32_39 dim 1 : vector<8x256xf32>, i32 -> vector<8x256xf32>
    %181 = vector.extract_strided_slice %4 {offsets = [6, 0], sizes = [1, 256], strides = [1, 1]} : vector<9x256xf32> to vector<1x256xf32>
    %182 = vector.broadcast %181 : vector<1x256xf32> to vector<8x256xf32>
    %183 = arith.mulf %180, %182 : vector<8x256xf32>
    %c240_i32_40 = arith.constant 240 : i32
    %184 = tpu.dynamic_rotate %159 by %c240_i32_40 dim 1 : vector<8x256xf32>, i32 -> vector<8x256xf32>
    %185 = vector.extract_strided_slice %4 {offsets = [7, 0], sizes = [1, 256], strides = [1, 1]} : vector<9x256xf32> to vector<1x256xf32>
    %186 = vector.broadcast %185 : vector<1x256xf32> to vector<8x256xf32>
    %187 = arith.mulf %184, %186 : vector<8x256xf32>
    %c239_i32_41 = arith.constant 239 : i32
    %188 = tpu.dynamic_rotate %159 by %c239_i32_41 dim 1 : vector<8x256xf32>, i32 -> vector<8x256xf32>
    %189 = vector.extract_strided_slice %4 {offsets = [8, 0], sizes = [1, 256], strides = [1, 1]} : vector<9x256xf32> to vector<1x256xf32>
    %190 = vector.broadcast %189 : vector<1x256xf32> to vector<8x256xf32>
    %191 = arith.mulf %188, %190 : vector<8x256xf32>
    %192 = tpu.concatenate %163, %167, %171, %175, %159, %179, %183, %187, %191 in 0 : vector<8x256xf32>, vector<8x256xf32>, vector<8x256xf32>, vector<8x256xf32>, vector<8x256xf32>, vector<8x256xf32>, vector<8x256xf32>, vector<8x256xf32>, vector<8x256xf32> -> vector<72x256xf32>
    %193 = arith.truncf %192 : vector<72x256xf32> to vector<72x256xbf16>
    %c0_42 = arith.constant 0 : index
    %c0_43 = arith.constant 0 : index
    %194 = vector.load %arg6[%c0_42, %c0_43] : memref<8x72xbf16, #tpu.memory_space<vmem>>, vector<8x72xbf16>
    %cst_44 = arith.constant dense<0.000000e+00> : vector<8x256xf32>
    %195 = tpu.matmul %194, %193, %cst_44 {dimension_numbers = #tpu.dot_dimension_numbers<[1], [0], [0], [1], [0, 0, 1, 1], [], []>} : vector<8x72xbf16>, vector<72x256xbf16>, vector<8x256xf32> -> vector<8x256xf32>
    %196 = vector.extract_strided_slice %5 {offsets = [0, 3], sizes = [8, 1], strides = [1, 1]} : vector<16x9xf32> to vector<8x1xf32>
    %197 = vector.broadcast %196 : vector<8x1xf32> to vector<8x256xf32>
    %198 = arith.addf %195, %197 : vector<8x256xf32>
    %199 = vector.extract_strided_slice %5 {offsets = [0, 4], sizes = [8, 1], strides = [1, 1]} : vector<16x9xf32> to vector<8x1xf32>
    %200 = vector.extract_strided_slice %5 {offsets = [0, 5], sizes = [8, 1], strides = [1, 1]} : vector<16x9xf32> to vector<8x1xf32>
    %cst_45 = arith.constant dense<0.000000e+00> : vector<8xf32>
    %201 = vector.multi_reduction <add>, %198, %cst_45 [1] : vector<8x256xf32> to vector<8xf32>
    %202 = vector.shape_cast %201 : vector<8xf32> to vector<8x1xf32>
    %203 = vector.extract_strided_slice %202 {offsets = [0, 0], sizes = [4, 1], strides = [1, 1]} : vector<8x1xf32> to vector<4x1xf32>
    %204 = vector.shape_cast %203 : vector<4x1xf32> to vector<1x4x1xf32>
    %cst_46 = arith.constant dense<0.000000e+00> : vector<1xf32>
    %205 = vector.multi_reduction <add>, %204, %cst_46 [1, 2] : vector<1x4x1xf32> to vector<1xf32>
    %206 = vector.shape_cast %205 : vector<1xf32> to vector<1x1x1xf32>
    %207 = vector.extract %206[0, 0, 0] : f32 from vector<1x1x1xf32>
    %208 = vector.broadcast %207 : f32 to vector<1x1xf32>
    %cst_47 = arith.constant 9.765625E-4 : f32
    %209 = vector.broadcast %cst_47 : f32 to vector<1x1xf32>
    %210 = arith.mulf %208, %209 : vector<1x1xf32>
    %211 = vector.shape_cast %210 : vector<1x1xf32> to vector<1x1xf32>
    %212 = vector.broadcast %211 : vector<1x1xf32> to vector<4x1xf32>
    %213 = vector.extract_strided_slice %202 {offsets = [4, 0], sizes = [4, 1], strides = [1, 1]} : vector<8x1xf32> to vector<4x1xf32>
    %214 = vector.shape_cast %213 : vector<4x1xf32> to vector<1x4x1xf32>
    %cst_48 = arith.constant dense<0.000000e+00> : vector<1xf32>
    %215 = vector.multi_reduction <add>, %214, %cst_48 [1, 2] : vector<1x4x1xf32> to vector<1xf32>
    %216 = vector.shape_cast %215 : vector<1xf32> to vector<1x1x1xf32>
    %217 = vector.extract %216[0, 0, 0] : f32 from vector<1x1x1xf32>
    %218 = vector.broadcast %217 : f32 to vector<1x1xf32>
    %cst_49 = arith.constant 9.765625E-4 : f32
    %219 = vector.broadcast %cst_49 : f32 to vector<1x1xf32>
    %220 = arith.mulf %218, %219 : vector<1x1xf32>
    %221 = vector.shape_cast %220 : vector<1x1xf32> to vector<1x1xf32>
    %222 = vector.broadcast %221 : vector<1x1xf32> to vector<4x1xf32>
    %223 = tpu.concatenate %212, %222 in 0 : vector<4x1xf32>, vector<4x1xf32> -> vector<8x1xf32>
    %224 = vector.broadcast %223 : vector<8x1xf32> to vector<8x256xf32>
    %225 = arith.subf %198, %224 : vector<8x256xf32>
    %226 = arith.mulf %225, %225 : vector<8x256xf32>
    %cst_50 = arith.constant dense<0.000000e+00> : vector<8xf32>
    %227 = vector.multi_reduction <add>, %226, %cst_50 [1] : vector<8x256xf32> to vector<8xf32>
    %228 = vector.shape_cast %227 : vector<8xf32> to vector<8x1xf32>
    %229 = vector.extract_strided_slice %228 {offsets = [0, 0], sizes = [4, 1], strides = [1, 1]} : vector<8x1xf32> to vector<4x1xf32>
    %230 = vector.shape_cast %229 : vector<4x1xf32> to vector<1x4x1xf32>
    %cst_51 = arith.constant dense<0.000000e+00> : vector<1xf32>
    %231 = vector.multi_reduction <add>, %230, %cst_51 [1, 2] : vector<1x4x1xf32> to vector<1xf32>
    %232 = vector.shape_cast %231 : vector<1xf32> to vector<1x1x1xf32>
    %233 = vector.extract %232[0, 0, 0] : f32 from vector<1x1x1xf32>
    %234 = vector.broadcast %233 : f32 to vector<1x1xf32>
    %cst_52 = arith.constant 9.765625E-4 : f32
    %235 = vector.broadcast %cst_52 : f32 to vector<1x1xf32>
    %236 = arith.mulf %234, %235 : vector<1x1xf32>
    %237 = vector.shape_cast %236 : vector<1x1xf32> to vector<1x1xf32>
    %238 = vector.broadcast %237 : vector<1x1xf32> to vector<4x1xf32>
    %239 = vector.extract_strided_slice %228 {offsets = [4, 0], sizes = [4, 1], strides = [1, 1]} : vector<8x1xf32> to vector<4x1xf32>
    %240 = vector.shape_cast %239 : vector<4x1xf32> to vector<1x4x1xf32>
    %cst_53 = arith.constant dense<0.000000e+00> : vector<1xf32>
    %241 = vector.multi_reduction <add>, %240, %cst_53 [1, 2] : vector<1x4x1xf32> to vector<1xf32>
    %242 = vector.shape_cast %241 : vector<1xf32> to vector<1x1x1xf32>
    %243 = vector.extract %242[0, 0, 0] : f32 from vector<1x1x1xf32>
    %244 = vector.broadcast %243 : f32 to vector<1x1xf32>
    %cst_54 = arith.constant 9.765625E-4 : f32
    %245 = vector.broadcast %cst_54 : f32 to vector<1x1xf32>
    %246 = arith.mulf %244, %245 : vector<1x1xf32>
    %247 = vector.shape_cast %246 : vector<1x1xf32> to vector<1x1xf32>
    %248 = vector.broadcast %247 : vector<1x1xf32> to vector<4x1xf32>
    %249 = tpu.concatenate %238, %248 in 0 : vector<4x1xf32>, vector<4x1xf32> -> vector<8x1xf32>
    %cst_55 = arith.constant 9.99999974E-6 : f32
    %250 = vector.broadcast %cst_55 : f32 to vector<8x1xf32>
    %251 = arith.addf %249, %250 : vector<8x1xf32>
    %252 = math.rsqrt %251 : vector<8x1xf32>
    %253 = vector.broadcast %252 : vector<8x1xf32> to vector<8x256xf32>
    %254 = arith.mulf %225, %253 : vector<8x256xf32>
    %255 = vector.broadcast %199 : vector<8x1xf32> to vector<8x256xf32>
    %256 = arith.mulf %254, %255 : vector<8x256xf32>
    %257 = vector.broadcast %200 : vector<8x1xf32> to vector<8x256xf32>
    %258 = arith.addf %256, %257 : vector<8x256xf32>
    %cst_56 = arith.constant 0.000000e+00 : f32
    %259 = vector.broadcast %cst_56 : f32 to vector<8x256xf32>
    %260 = arith.maximumf %258, %259 : vector<8x256xf32>
    %261 = tpu.concatenate %158, %260 in 0 : vector<8x256xf32>, vector<8x256xf32> -> vector<16x256xf32>
    %262 = arith.truncf %261 : vector<16x256xf32> to vector<16x256xbf16>
    %c0_57 = arith.constant 0 : index
    %c0_58 = arith.constant 0 : index
    %263 = vector.load %arg7[%c0_57, %c0_58] : memref<4x16xbf16, #tpu.memory_space<vmem>>, vector<4x16xbf16>
    %cst_59 = arith.constant dense<0.000000e+00> : vector<4x256xf32>
    %264 = tpu.matmul %263, %262, %cst_59 {dimension_numbers = #tpu.dot_dimension_numbers<[1], [0], [0], [1], [0, 0, 1, 1], [], []>} : vector<4x16xbf16>, vector<16x256xbf16>, vector<4x256xf32> -> vector<4x256xf32>
    %265 = vector.extract_strided_slice %5 {offsets = [0, 6], sizes = [4, 1], strides = [1, 1]} : vector<16x9xf32> to vector<4x1xf32>
    %266 = vector.broadcast %265 : vector<4x1xf32> to vector<4x256xf32>
    %267 = arith.addf %264, %266 : vector<4x256xf32>
    %268 = vector.extract_strided_slice %5 {offsets = [0, 7], sizes = [4, 1], strides = [1, 1]} : vector<16x9xf32> to vector<4x1xf32>
    %269 = vector.extract_strided_slice %5 {offsets = [0, 8], sizes = [4, 1], strides = [1, 1]} : vector<16x9xf32> to vector<4x1xf32>
    %cst_60 = arith.constant dense<0.000000e+00> : vector<4xf32>
    %270 = vector.multi_reduction <add>, %267, %cst_60 [1] : vector<4x256xf32> to vector<4xf32>
    %271 = vector.shape_cast %270 : vector<4xf32> to vector<4x1xf32>
    %272 = vector.extract_strided_slice %271 {offsets = [0, 0], sizes = [2, 1], strides = [1, 1]} : vector<4x1xf32> to vector<2x1xf32>
    %273 = vector.shape_cast %272 : vector<2x1xf32> to vector<1x2x1xf32>
    %cst_61 = arith.constant dense<0.000000e+00> : vector<1xf32>
    %274 = vector.multi_reduction <add>, %273, %cst_61 [1, 2] : vector<1x2x1xf32> to vector<1xf32>
    %275 = vector.shape_cast %274 : vector<1xf32> to vector<1x1x1xf32>
    %276 = vector.extract %275[0, 0, 0] : f32 from vector<1x1x1xf32>
    %277 = vector.broadcast %276 : f32 to vector<1x1xf32>
    %cst_62 = arith.constant 0.001953125 : f32
    %278 = vector.broadcast %cst_62 : f32 to vector<1x1xf32>
    %279 = arith.mulf %277, %278 : vector<1x1xf32>
    %280 = vector.shape_cast %279 : vector<1x1xf32> to vector<1x1xf32>
    %281 = vector.broadcast %280 : vector<1x1xf32> to vector<2x1xf32>
    %282 = vector.extract_strided_slice %271 {offsets = [2, 0], sizes = [2, 1], strides = [1, 1]} : vector<4x1xf32> to vector<2x1xf32>
    %283 = vector.shape_cast %282 : vector<2x1xf32> to vector<1x2x1xf32>
    %cst_63 = arith.constant dense<0.000000e+00> : vector<1xf32>
    %284 = vector.multi_reduction <add>, %283, %cst_63 [1, 2] : vector<1x2x1xf32> to vector<1xf32>
    %285 = vector.shape_cast %284 : vector<1xf32> to vector<1x1x1xf32>
    %286 = vector.extract %285[0, 0, 0] : f32 from vector<1x1x1xf32>
    %287 = vector.broadcast %286 : f32 to vector<1x1xf32>
    %cst_64 = arith.constant 0.001953125 : f32
    %288 = vector.broadcast %cst_64 : f32 to vector<1x1xf32>
    %289 = arith.mulf %287, %288 : vector<1x1xf32>
    %290 = vector.shape_cast %289 : vector<1x1xf32> to vector<1x1xf32>
    %291 = vector.broadcast %290 : vector<1x1xf32> to vector<2x1xf32>
    %292 = tpu.concatenate %281, %291 in 0 : vector<2x1xf32>, vector<2x1xf32> -> vector<4x1xf32>
    %293 = vector.broadcast %292 : vector<4x1xf32> to vector<4x256xf32>
    %294 = arith.subf %267, %293 : vector<4x256xf32>
    %295 = arith.mulf %294, %294 : vector<4x256xf32>
    %cst_65 = arith.constant dense<0.000000e+00> : vector<4xf32>
    %296 = vector.multi_reduction <add>, %295, %cst_65 [1] : vector<4x256xf32> to vector<4xf32>
    %297 = vector.shape_cast %296 : vector<4xf32> to vector<4x1xf32>
    %298 = vector.extract_strided_slice %297 {offsets = [0, 0], sizes = [2, 1], strides = [1, 1]} : vector<4x1xf32> to vector<2x1xf32>
    %299 = vector.shape_cast %298 : vector<2x1xf32> to vector<1x2x1xf32>
    %cst_66 = arith.constant dense<0.000000e+00> : vector<1xf32>
    %300 = vector.multi_reduction <add>, %299, %cst_66 [1, 2] : vector<1x2x1xf32> to vector<1xf32>
    %301 = vector.shape_cast %300 : vector<1xf32> to vector<1x1x1xf32>
    %302 = vector.extract %301[0, 0, 0] : f32 from vector<1x1x1xf32>
    %303 = vector.broadcast %302 : f32 to vector<1x1xf32>
    %cst_67 = arith.constant 0.001953125 : f32
    %304 = vector.broadcast %cst_67 : f32 to vector<1x1xf32>
    %305 = arith.mulf %303, %304 : vector<1x1xf32>
    %306 = vector.shape_cast %305 : vector<1x1xf32> to vector<1x1xf32>
    %307 = vector.broadcast %306 : vector<1x1xf32> to vector<2x1xf32>
    %308 = vector.extract_strided_slice %297 {offsets = [2, 0], sizes = [2, 1], strides = [1, 1]} : vector<4x1xf32> to vector<2x1xf32>
    %309 = vector.shape_cast %308 : vector<2x1xf32> to vector<1x2x1xf32>
    %cst_68 = arith.constant dense<0.000000e+00> : vector<1xf32>
    %310 = vector.multi_reduction <add>, %309, %cst_68 [1, 2] : vector<1x2x1xf32> to vector<1xf32>
    %311 = vector.shape_cast %310 : vector<1xf32> to vector<1x1x1xf32>
    %312 = vector.extract %311[0, 0, 0] : f32 from vector<1x1x1xf32>
    %313 = vector.broadcast %312 : f32 to vector<1x1xf32>
    %cst_69 = arith.constant 0.001953125 : f32
    %314 = vector.broadcast %cst_69 : f32 to vector<1x1xf32>
    %315 = arith.mulf %313, %314 : vector<1x1xf32>
    %316 = vector.shape_cast %315 : vector<1x1xf32> to vector<1x1xf32>
    %317 = vector.broadcast %316 : vector<1x1xf32> to vector<2x1xf32>
    %318 = tpu.concatenate %307, %317 in 0 : vector<2x1xf32>, vector<2x1xf32> -> vector<4x1xf32>
    %cst_70 = arith.constant 9.99999974E-6 : f32
    %319 = vector.broadcast %cst_70 : f32 to vector<4x1xf32>
    %320 = arith.addf %318, %319 : vector<4x1xf32>
    %321 = math.rsqrt %320 : vector<4x1xf32>
    %322 = vector.broadcast %321 : vector<4x1xf32> to vector<4x256xf32>
    %323 = arith.mulf %294, %322 : vector<4x256xf32>
    %324 = vector.broadcast %268 : vector<4x1xf32> to vector<4x256xf32>
    %325 = arith.mulf %323, %324 : vector<4x256xf32>
    %326 = vector.broadcast %269 : vector<4x1xf32> to vector<4x256xf32>
    %327 = arith.addf %325, %326 : vector<4x256xf32>
    %cst_71 = arith.constant 0.000000e+00 : f32
    %328 = vector.broadcast %cst_71 : f32 to vector<4x256xf32>
    %329 = arith.maximumf %327, %328 : vector<4x256xf32>
    %330 = vector.extract_strided_slice %7 {offsets = [0, 0], sizes = [4, 256], strides = [1, 1]} : vector<8x256xf32> to vector<4x256xf32>
    %331 = arith.addf %330, %329 : vector<4x256xf32>
    %c0_72 = arith.constant 0 : index
    %c0_73 = arith.constant 0 : index
    %c0_74 = arith.constant 0 : index
    %332 = vector.load %arg9[%c0_72, %c0_73, %c0_74] : memref<1x4x256xf32, #tpu.memory_space<vmem>>, vector<1x4x256xf32>
    %333 = vector.shape_cast %332 : vector<1x4x256xf32> to vector<4x256xf32>
    %334 = vector.shape_cast %331 : vector<4x256xf32> to vector<1x4x256xf32>
    tpu.vector_store %arg9[%c0_72, %c0_73, %c0_74], %334 {strides = array<i32>} : memref<1x4x256xf32, #tpu.memory_space<vmem>>, vector<1x4x256xf32>,
    return
  }
  func.func @transform_0(%arg0: i32) -> (i32, i32, i32) {
    %c0_i32 = arith.constant 0 : i32
    %c0_i32_0 = arith.constant 0 : i32
    %c0_i32_1 = arith.constant 0 : i32
    return %arg0, %c0_i32, %c0_i32_0 : i32, i32, i32
  }
  func.func @transform_1(%arg0: i32) -> (i32, i32, i32) {
    %c0_i32 = arith.constant 0 : i32
    %c0_i32_0 = arith.constant 0 : i32
    %c0_i32_1 = arith.constant 0 : i32
    return %arg0, %c0_i32, %c0_i32_0 : i32, i32, i32
  }
  func.func @transform_2(%arg0: i32) -> (i32, i32) {
    %c0_i32 = arith.constant 0 : i32
    %c0_i32_0 = arith.constant 0 : i32
    %c0_i32_1 = arith.constant 0 : i32
    return %c0_i32, %c0_i32_0 : i32, i32
  }
  func.func @transform_3(%arg0: i32) -> (i32, i32) {
    %c0_i32 = arith.constant 0 : i32
    %c0_i32_0 = arith.constant 0 : i32
    %c0_i32_1 = arith.constant 0 : i32
    return %c0_i32, %c0_i32_0 : i32, i32
  }
  func.func @transform_4(%arg0: i32) -> (i32, i32) {
    %c0_i32 = arith.constant 0 : i32
    %c0_i32_0 = arith.constant 0 : i32
    %c0_i32_1 = arith.constant 0 : i32
    return %c0_i32, %c0_i32_0 : i32, i32
  }
  func.func @transform_5(%arg0: i32) -> (i32, i32) {
    %c0_i32 = arith.constant 0 : i32
    %c0_i32_0 = arith.constant 0 : i32
    %c0_i32_1 = arith.constant 0 : i32
    return %c0_i32, %c0_i32_0 : i32, i32
  }
  func.func @transform_6(%arg0: i32) -> (i32, i32) {
    %c0_i32 = arith.constant 0 : i32
    %c0_i32_0 = arith.constant 0 : i32
    %c0_i32_1 = arith.constant 0 : i32
    return %c0_i32, %c0_i32_0 : i32, i32
  }
  func.func @transform_7(%arg0: i32) -> (i32, i32) {
    %c0_i32 = arith.constant 0 : i32
    %c0_i32_0 = arith.constant 0 : i32
    %c0_i32_1 = arith.constant 0 : i32
    return %c0_i32, %c0_i32_0 : i32, i32
  }
  func.func @transform_8(%arg0: i32) -> (i32, i32, i32) {
    %c0_i32 = arith.constant 0 : i32
    %c0_i32_0 = arith.constant 0 : i32
    %c0_i32_1 = arith.constant 0 : i32
    return %arg0, %c0_i32, %c0_i32_0 : i32, i32, i32
  }
}

</mosaic_0001>

<bundles_post_ra>
// kernel: motion_refiner_pallas.1
= control target key start
LH: loop header
LB: loop body
LE: loop exit
PB: predicated region body
PF: predicated region fallthrough
CT: control target
= control target key end

     0   :  { %s2001_s27 = smov 0   ;;  %s2849_s0 = inlined_call_operand.vmem [shape: f32[2,8,64], index: 0, kind: input, shape index: {}]   ;;  %s2850_s1 = inlined_call_operand.vmem [shape: f32[2,8,256], index: 1, kind: input, shape index: {}]   ;;  %s2851_s2 = inlined_call_operand.vmem [shape: f32[64,256], index: 2, kind: input, shape index: {}]   ;;  %s2852_s3 = inlined_call_operand.vmem [shape: f32[9,256], index: 3, kind: input, shape index: {}]   ;;  %s2853_s4 = inlined_call_operand.vmem [shape: bf16[16,144], index: 4, kind: input, shape index: {}]   ;;  %s2854_s5 = inlined_call_operand.vmem [shape: bf16[8,72], index: 5, kind: input, shape index: {}]   ;;  %s2855_s6 = inlined_call_operand.vmem [shape: bf16[4,16], index: 6, kind: input, shape index: {}]   ;;  %s2856_s7 = inlined_call_operand.vmem [shape: f32[16,9], index: 7, kind: input, shape index: {}]   ;;  %s2857_s8 = inlined_call_operand.vmem [shape: f32[2,4,256], index: 8, kind: output, shape index: {}]  }
   0x1 LB: > { %s1816_s28 = sadd.s32 4294967295, %s1937_s27   ;;  %p1820_p0 = scmp.ge.s32.totalorder %s1937_s27, 1  ;;  %s1937_s27 = sphi %s2001_s27, %s18_s27  }
   0x2   : > { %p271_p1 = scmp.lt.s32.totalorder %s1937_s27, 3 }
   0x4   : > { %p272_p2 = pnand %p1820_p0, %p271_p1 }
   0x5   : > { %p2018_p3 = scmp.lt.s32.totalorder (!%p272_p2), %s1816_s28, 1  ;;  %s1939_s18 = smov (!%p272_p2), 113  }
   0x6   : > { %275 = sbr.rel (%p272_p2) target bundleno = 3527 (0xdc7), region = 52  ;;  %s1940_s23 = smov (!%p272_p2), 112  }
   0x7   : > { %s1941_s11 = smov (!%p272_p2), 127   ;;  %s1943_s13 = smov (!%p272_p2), 1  }
   0x8   : > { %s1944_s14 = smov (!%p272_p2), 16   ;;  %s1946_s16 = smov (!%p272_p2), 111  }
   0xb   : > { %v347_v0 = vld [vmem:[%s2851_s2 + $0x70] sm:$0xff]  ;;  %v345_v1 = vld [vmem:[%s2851_s2 + $0x60] sm:$0xff]  ;;  %s2860_s28 = smov (!%p2018_p3, %s1816_s28), 1  ;;  %v348_v22 = vld [vmem:[%s2851_s2 + $0x78] sm:$0xff]  ;;  %vm349_vm0 = vcmask 523264   ;;  %vm1110_vm9 = vcmask 130048  }
   0xc   : > { %v343_v2 = vld [vmem:[%s2851_s2 + $0x50] sm:$0xff]  ;;  %v2022_v3 = vand.u32 4294901760, %v347_v0  ;;  %v2024_v4 = vand.u32 4294901760, %v345_v1  ;;  %v341_v6 = vld [vmem:[%s2851_s2 + $0x40] sm:$0xff]  ;;  %s1821_s26 = sshll.u32 %s2860_s28, 3  ;;  %s1842_s29 = sshll.u32 %s2860_s28, 4 }
   0xd   : > { %v2026_v5 = vand.u32 4294901760, %v343_v2  ;;  %v339_v7 = vld [vmem:[%s2851_s2 + $0x30] sm:$0xff]  ;;  %v337_v8 = vld [vmem:[%s2851_s2 + $0x20] sm:$0xff]  ;;  %v2037_v9 = vand.u32 4294901760, %v341_v6  ;;  %v346_v30 = vld [vmem:[%s2851_s2 + $0x68] sm:$0xff]  ;;  %s312_s12 = scalar_lea.vmem %s2849_s0, %s1821_s26  ;;  %s2105_s15 = scalar_lea.vmem %s2850_s1, %s1842_s29  ;;  %v2118_v34 = vand.u32 4294901760, %v348_v22 }
   0xe   : > { %v2039_v10 = vand.u32 4294901760, %v339_v7  ;;  %v2041_v11 = vand.u32 4294901760, %v337_v8  ;;  %v335_v12 = vld [vmem:[%s2851_s2 + $0x10] sm:$0xff]  ;;  %v333_v13 = vld [vmem:[%s2851_s2] sm:$0xff]  ;;  %362 = vmatpush.msra.mxu0 %v2022_v3  ;;  %v2051_v14 = vsub.f32 %v347_v0, %v2022_v3  ;;  %v2054_v15 = vsub.f32 %v345_v1, %v2024_v4  ;;  %494 = vmatpush.msra.mxu3 %v2022_v3  ;;  %v344_v38 = vld [vmem:[%s2851_s2 + $0x58] sm:$0xff] }
   0xf   : > { %v2058_v16 = vsub.f32 %v343_v2, %v2026_v5  ;;  %v2060_v17 = vand.u32 4294901760, %v335_v12  ;;  %v2067_v18 = vsub.f32 %v341_v6, %v2037_v9  ;;  %v2075_v21 = vand.u32 4294901760, %v333_v13  ;;  %v2121_v35 = vld [vmem:[%s2105_s15] sm:$0xff]  ;;  %v342_v42 = vld [vmem:[%s2851_s2 + $0x48] sm:$0xff]  ;;  %v340_v47 = vld [vmem:[%s2851_s2 + $0x38] sm:$0xff] }
  0x10   : > { %v2070_v19 = vsub.f32 %v339_v7, %v2039_v10  ;;  %v2073_v20 = vsub.f32 %v337_v8, %v2041_v11  ;;  %457 = vmatpush.msra.mxu2 %v2051_v14  ;;  %364 = vmatpush.msra.mxu0 %v2024_v4  ;;  %v396_v23 = vand.u32 4294901760, %v2051_v14  ;;  %v402_v24 = vand.u32 4294901760, %v2054_v15  ;;  %v324_v43 = vld [vmem:[%s312_s12] sm:$0xff]  ;;  %v338_v56 = vld [vmem:[%s2851_s2 + $0x28] sm:$0xff]  ;;  %v336_v1 = vld [vmem:[%s2851_s2 + $0x18] sm:$0xff]  ;;  %s1942_s12 = smov 15  }
  0x11   : > { %v408_v25 = vand.u32 4294901760, %v2058_v16  ;;  %496 = vmatpush.msra.mxu3 %v2024_v4  ;;  %v414_v26 = vand.u32 4294901760, %v2067_v18  ;;  %v2091_v28 = vsub.f32 %v335_v12, %v2060_v17  ;;  %v2128_v37 = vsub.f32 %v333_v13, %v2075_v21  ;;  %938 = vrot.lane.b32.xlu2 %v2121_v35, %s1939_s18 }
  0x12   : > { %v420_v27 = vand.u32 4294901760, %v2070_v19  ;;  %v426_v29 = vand.u32 4294901760, %v2073_v20  ;;  %460 = vmatpush.msra.mxu2 %v2054_v15  ;;  %366 = vmatpush.msra.mxu0 %v2026_v5  ;;  %v397_v31 = vsub.f32 %v2051_v14, %v396_v23  ;;  %v403_v32 = vsub.f32 %v2054_v15, %v402_v24 }
  0x13   : > { %v409_v33 = vsub.f32 %v2058_v16, %v408_v25  ;;  %498 = vmatpush.msra.mxu3 %v2026_v5  ;;  %v415_v36 = vsub.f32 %v2067_v18, %v414_v26  ;;  %v2137_v41 = vand.u32 4294901760, %v346_v30  ;;  %v432_v46 = vand.u32 4294901760, %v2091_v28  ;;  %959 = vrot.lane.b32.xlu0 %v2121_v35, %s1940_s23 }
  0x14   : > { %v398_v39 = vand.u32 4294901760, %v397_v31  ;;  %463 = vmatpush.msra.mxu2 %v2058_v16  ;;  %368 = vmatpush.msra.mxu0 %v2037_v9  ;;  %v404_v40 = vand.u32 4294901760, %v403_v32  ;;  %v421_v44 = vsub.f32 %v2070_v19, %v420_v27  ;;  %v427_v45 = vsub.f32 %v2073_v20, %v426_v29  ;;  %v334_v31 = vld [vmem:[%s2851_s2 + $0x8] sm:$0xff] }
  0x15   : > { %500 = vmatpush.msra.mxu3 %v2037_v9  ;;  %v410_v48 = vand.u32 4294901760, %v409_v33  ;;  %v2157_v49 = vsub.f32 %v348_v22, %v2118_v34  ;;  %v2159_v50 = vand.u32 4294901760, %v344_v38  ;;  %v2162_v51 = vsub.f32 %v346_v30, %v2137_v41 }
  0x16   : > { %399 = vmatpush.msra.mxu1 %v398_v39  ;;  %466 = vmatpush.msra.mxu2 %v2067_v18  ;;  %v416_v52 = vand.u32 4294901760, %v415_v36  ;;  %v438_v53 = vand.u32 4294901760, %v2128_v37  ;;  %v2167_v54 = vand.u32 4294901760, %v342_v42  ;;  %v351_v55 = vsel %vm349_vm0, %v324_v43, 0 }
  0x17   : > { %370 = vmatpush.msra.mxu0 %v2039_v10  ;;  %502 = vmatpush.msra.mxu3 %v2039_v10  ;;  %v633_v57 = vand.u32 4294901760, %v2157_v49  ;;  %v639_v58 = vand.u32 4294901760, %v2162_v51  ;;  %v2177_v59 = vsub.f32 %v344_v38, %v2159_v50  ;;  %v2179_v60 = vand.u32 4294901760, %v340_v47 }
  0x18   : > { %405 = vmatpush.msra.mxu1 %v404_v40  ;;  %469 = vmatpush.msra.mxu2 %v2070_v19  ;;  %v422_v61 = vand.u32 4294901760, %v421_v44  ;;  %v433_v62 = vsub.f32 %v2091_v28, %v432_v46  ;;  %v2186_v63 = vand.u32 4294901760, %v351_v55  ;;  %v2189_v0 = vsub.f32 %v342_v42, %v2167_v54 }
  0x19   : > { %372 = vmatpush.msra.mxu0 %v2041_v11  ;;  %504 = vmatpush.msra.mxu3 %v2041_v11  ;;  %v634_v2 = vsub.f32 %v2157_v49, %v633_v57  ;;  %v640_v6 = vsub.f32 %v2162_v51, %v639_v58  ;;  %v645_v7 = vand.u32 4294901760, %v2177_v59  ;;  %v2202_v8 = vand.u32 4294901760, %v338_v56 }
  0x1a   : > { %411 = vmatpush.msra.mxu1 %v410_v48  ;;  %472 = vmatpush.msra.mxu2 %v2073_v20  ;;  %v428_v12 = vand.u32 4294901760, %v427_v45  ;;  %v439_v13 = vsub.f32 %v2128_v37, %v438_v53  ;;  %v2210_v22 = vsub.f32 %v351_v55, %v2186_v63  ;;  %v651_v30 = vand.u32 4294901760, %v2189_v0 }
  0x1b   : > { %374 = vmatpush.msra.mxu0 %v2060_v17  ;;  %506 = vmatpush.msra.mxu3 %v2060_v17  ;;  %v635_v32 = vand.u32 4294901760, %v634_v2  ;;  %v646_v33 = vsub.f32 %v2177_v59, %v645_v7  ;;  %v2221_v36 = vsub.f32 %v340_v47, %v2179_v60  ;;  %v2223_v38 = vand.u32 4294901760, %v336_v1 }
  0x1c   : > { %417 = vmatpush.msra.mxu1 %v416_v52  ;;  %475 = vmatpush.msra.mxu2 %v2091_v28  ;;  %v434_v39 = vand.u32 4294901760, %v433_v62  ;;  %v2228_v40 = vand.u32 4294901760, %v2210_v22  ;;  %v641_v42 = vand.u32 4294901760, %v640_v6  ;;  %v652_v43 = vsub.f32 %v2189_v0, %v651_v30 }
  0x1d   : > { %376 = vmatpush.msra.mxu0 %v2075_v21  ;;  %508 = vmatpush.msra.mxu3 %v2075_v21  ;;  %v2235_v44 = vsub.f32 %v338_v56, %v2202_v8  ;;  %v2237_v45 = vand.u32 4294901760, %v334_v31  ;;  %v440_v47 = vand.u32 4294901760, %v439_v13  ;;  %v647_v48 = vand.u32 4294901760, %v646_v33 }
  0x1e   : > { %423 = vmatpush.msra.mxu1 %v422_v61  ;;  %478 = vmatpush.msra.mxu2 %v2128_v37  ;;  %v657_v52 = vand.u32 4294901760, %v2221_v36  ;;  %v2244_v55 = vsub.f32 %v336_v1, %v2223_v38  ;;  %v380_v14 = vsub.f32 %v2210_v22, %v2228_v40  ;;  %vm1176_vm10 = vcmask 3072  }
  0x1f   : > { %527 = vmatpush.msrb.mxu0 %v396_v23  ;;  %636 = vmatpush.msrb.mxu3 %v635_v32  ;;  %v653_v23 = vand.u32 4294901760, %v652_v43  ;;  %v663_v56 = vand.u32 4294901760, %v2235_v44  ;;  %v2253_v61 = vsub.f32 %v334_v31, %v2237_v45  ;;  %v835_v32 = vlaneseq }
  0x20   : > { %599 = vmatpush.msrb.mxu2 %v2118_v34  ;;  %429 = vmatpush.msra.mxu1 %v428_v12  ;;  %v658_v15 = vsub.f32 %v2221_v36, %v657_v52  ;;  %v381_v62 = vand.u32 4294901760, %v380_v14  ;;  %vm1231_vm11 = vcmask 1043456   ;;  %vm1457_vm15 = vcmask 588800  }
  0x21   : > { %531 = vmatpush.msrb.mxu0 %v402_v24  ;;  %642 = vmatpush.msrb.mxu3 %v641_v42  ;;  %v669_v24 = vand.u32 4294901760, %v2244_v55  ;;  %v664_v16 = vsub.f32 %v2235_v44, %v663_v56  ;;  %v2434_v42 = vld [vmem:[%s2852_s3 + $0x8] sm:$0xff] }
  0x22   : > { %601 = vmatpush.msrb.mxu2 %v2137_v41  ;;  %435 = vmatpush.msra.mxu1 %v434_v39  ;;  %v2424_v39 = vand.u32 127, %v835_v32 }
  0x23   : > { %535 = vmatpush.msrb.mxu0 %v408_v25  ;;  %648 = vmatpush.msrb.mxu3 %v647_v48  ;;  %v675_v25 = vand.u32 4294901760, %v2253_v61  ;;  %v670_v18 = vsub.f32 %v2244_v55, %v669_v24 }
  0x24   : > { %603 = vmatpush.msrb.mxu2 %v2159_v50  ;;  %441 = vmatpush.msra.mxu1 %v440_v47  ;;  %vm965_vm1 = vcmp.lt.s32.totalorder %v2424_v39, 112  ;;  %vm944_vm2 = vcmp.lt.s32.totalorder %v2424_v39, 113  ;;  %vm923_vm3 = vcmp.lt.s32.totalorder %v2424_v39, 127  ;;  %vm900_vm4 = vcmp.lt.s32.totalorder %v2424_v39, 1 }
  0x25   : > { %539 = vmatpush.msrb.mxu0 %v414_v26  ;;  %654 = vmatpush.msrb.mxu3 %v653_v23  ;;  %v676_v26 = vsub.f32 %v2253_v61, %v675_v25  ;;  %v671_v19 = vand.u32 4294901760, %v670_v18  ;;  %vm858_vm5 = vcmp.lt.s32.totalorder %v2424_v39, 16  ;;  %vm879_vm6 = vcmp.lt.s32.totalorder %v2424_v39, 15 }
  0x26   : > { %570 = vmatpush.msrb.mxu1 %v2022_v3  ;;  %605 = vmatpush.msrb.mxu2 %v2167_v54  ;;  %v659_v3 = vand.u32 4294901760, %v658_v15  ;;  %vm837_vm7 = vcmp.lt.s32.totalorder %v2424_v39, 17  ;;  %vm986_vm8 = vcmp.lt.s32.totalorder %v2424_v39, 111 }
  0x27   : > { %481 = vmatmul.f32.vlgmr.msra.gmra.mxu2 %v2210_v22  ;;  %543 = vmatpush.msrb.mxu0 %v420_v27 }
  0x28   : > { %572 = vmatpush.msrb.mxu1 %v2024_v4  ;;  %607 = vmatpush.msrb.mxu2 %v2179_v60  ;;  %v665_v4 = vand.u32 4294901760, %v664_v16 }
  0x29   : > { %382 = vmatmul.f32.vlgmr.msra.gmra.mxu0 %v381_v62  ;;  %512 = vmatmul.f32.vlgmr.msra.gmra.mxu3 %v2228_v40 }
  0x2a   : > { %574 = vmatpush.msrb.mxu1 %v2026_v5  ;;  %547 = vmatpush.msrb.mxu0 %v426_v29  ;;  %v677_v5 = vand.u32 4294901760, %v676_v26 }
  0x2b   : > { %609 = vmatpush.msrb.mxu2 %v2202_v8  ;;  %660 = vmatpush.msrb.mxu3 %v659_v3 }
  0x2c   : > { %576 = vmatpush.msrb.mxu1 %v2037_v9  ;;  %551 = vmatpush.msrb.mxu0 %v432_v46  ;;  %v2334_v9 = vld [vmem:[%s2105_s15 + $0x8] sm:$0xff]  ;;  %s1945_s15 = smov 17  }
  0x2d   : > { %443 = vmatmul.f32.vlgmr.msra.gmra.mxu1 %v2186_v63  ;;  %611 = vmatpush.msrb.mxu2 %v2223_v38  ;;  %v2504_v32 = vpack.c.bf16 %v2334_v9, %v2121_v35 }
  0x2e   : > { %578 = vmatpush.msrb.mxu1 %v2039_v10  ;;  %666 = vmatpush.msrb.mxu3 %v665_v4 }
  0x2f   : > { %555 = vmatpush.msrb.mxu0 %v438_v53  ;;  %613 = vmatpush.msrb.mxu2 %v2237_v45 }
  0x30   : > { %580 = vmatpush.msrb.mxu1 %v2041_v11  ;;  %672 = vmatpush.msrb.mxu3 %v671_v19 }
  0x31   : > { %694 = vmatpush.msra.mxu0 %v2157_v49  ;;  %764 = vmatpush.msra.mxu2 %v633_v57 }
  0x32   : > { %582 = vmatpush.msrb.mxu1 %v2060_v17  ;;  %678 = vmatpush.msrb.mxu3 %v677_v5 }
  0x33   : > { %557 = vmatmul.f32.vlgmr.msrb.gmra.mxu0 %v2186_v63  ;;  %768 = vmatpush.msra.mxu2 %v639_v58 }
  0x34   : > { %697 = vmatpush.msra.mxu0 %v2162_v51  ;;  %807 = vmatpush.msra.mxu3 %v2118_v34 }
  0x35   : > { %584 = vmatpush.msrb.mxu1 %v2075_v21  ;;  %772 = vmatpush.msra.mxu2 %v645_v7 }
  0x36   : > { %586 = vmatmul.f32.vlgmr.msrb.gmra.mxu1 %v2186_v63  ;;  %700 = vmatpush.msra.mxu0 %v2177_v59 }
  0x37   : > { %731 = vmatpush.msra.mxu1 %v2118_v34  ;;  %809 = vmatpush.msra.mxu3 %v2137_v41 }
  0x38   : > { %703 = vmatpush.msra.mxu0 %v2189_v0  ;;  %776 = vmatpush.msra.mxu2 %v651_v30 }
  0x39   : > { %733 = vmatpush.msra.mxu1 %v2137_v41  ;;  %811 = vmatpush.msra.mxu3 %v2159_v50 }
  0x3a   : > { %619 = vmatmul.f32.vlgmr.msrb.gmra.mxu2 %v381_v62  ;;  %680 = vmatmul.f32.vlgmr.msrb.gmra.mxu3 %v2186_v63 }
  0x3b   : > { %706 = vmatpush.msra.mxu0 %v2221_v36  ;;  %735 = vmatpush.msra.mxu1 %v2159_v50 }
  0x3c   : > { %780 = vmatpush.msra.mxu2 %v657_v52  ;;  %813 = vmatpush.msra.mxu3 %v2167_v54 }
  0x3d   : > { %709 = vmatpush.msra.mxu0 %v2235_v44  ;;  %737 = vmatpush.msra.mxu1 %v2167_v54  ;;  %v2441_v44 = vperm.slane %v2434_v42, 7 }
  0x3e   : > { %784 = vmatpush.msra.mxu2 %v663_v56  ;;  %815 = vmatpush.msra.mxu3 %v2179_v60 }
  0x3f   : > { %712 = vmatpush.msra.mxu0 %v2244_v55  ;;  %739 = vmatpush.msra.mxu1 %v2179_v60 }
  0x40   : > { %788 = vmatpush.msra.mxu2 %v669_v24  ;;  %817 = vmatpush.msra.mxu3 %v2202_v8 }
  0x41   : > { %715 = vmatpush.msra.mxu0 %v2253_v61  ;;  %741 = vmatpush.msra.mxu1 %v2202_v8  ;;  %v2460_v61 = vperm.slane %v2434_v42, 6 }
  0x42   : > { %792 = vmatpush.msra.mxu2 %v675_v25  ;;  %819 = vmatpush.msra.mxu3 %v2223_v38 }
  0x43   : > { %718 = vmatmul.f32.vlgmr.msra.gmra.mxu0 %v2210_v22  ;;  %794 = vmatmul.f32.vlgmr.msra.gmra.mxu2 %v2186_v63 }
  0x44   : > { %743 = vmatpush.msra.mxu1 %v2223_v38  ;;  %821 = vmatpush.msra.mxu3 %v2237_v45 }
  0x45   : > { %823 = vmatmul.f32.vlgmr.msra.gmra.mxu3 %v2186_v63  ;;  %963 = vrot.lane.b32.xlu1 %v2334_v9, %s1940_s23 }
  0x46   : > { %745 = vmatpush.msra.mxu1 %v2237_v45  ;;  %921 = vrot.lane.b32.xlu2 %v2334_v9, %s1941_s11 }
  0x47   : > { %749 = vmatmul.f32.vlgmr.msra.gmra.mxu1 %v2228_v40  ;;  %917 = vrot.lane.b32.xlu0 %v2121_v35, %s1941_s11  ;;  %v2429_v40 = vld [vmem:[%s2852_s3] sm:$0xff] }
  0x48   : > { %v2438_v43 = vperm.slane %v2429_v40, 7  ;;  %v2457_v56 = vperm.slane %v2429_v40, 6 }
  0x4d   : > { %942 = vrot.lane.b32.xlu1 %v2334_v9, %s1939_s18 }
  0x4e   : > { %873 = vrot.lane.b32.xlu2 %v2121_v35, %s1942_s12 }
  0x4f   : > { %898 = vrot.lane.b32.xlu0 %v2334_v9, %s1943_s13 }
  0x55   : > { %894 = vrot.lane.b32.xlu1 %v2121_v35, %s1943_s13 }
  0x56   : > { %856 = vrot.lane.b32.xlu2 %v2334_v9, %s1944_s14 }
  0x57   : > { %852 = vrot.lane.b32.xlu0 %v2121_v35, %s1944_s14 }
  0x5d   : > { %877 = vrot.lane.b32.xlu1 %v2334_v9, %s1942_s12 }
  0x6b   : > { %v939_v1 = vpop.permute.xlu2 %938 }
  0x85   : > { %v960_v0 = vpop.permute.xlu0 %959 }
  0xa0   : > { %v2410_v7 = vpop.permute.xlu2 %921 }
  0xa6   : > { %v383_v10 = vpop.f32.mrf.mxu0 }
  0xa8   : > { %v2414_v13 = vpop.permute.xlu2 %873 }
  0xaa   : > { %v444_v11 = vpop.f32.mrf.mxu1  ;;  %v482_v20 = vpop.f32.mrf.mxu2 }
  0xab   : > { %v445_v17 = vadd.f32 %v444_v11, %v383_v10 }
  0xac   : > { %v513_v27 = vpop.f32.mrf.mxu3 }
  0xad   : > { %v483_v21 = vadd.f32 %v482_v20, %v445_v17 }
  0xaf   : > { %v514_v28 = vadd.f32 %v513_v27, %v483_v21 }
  0xb0   : > { %v558_v29 = vpop.f32.mrf.mxu0  ;;  %v2420_v31 = vpop.permute.xlu2 %856 }
  0xb1   : > { %v559_v34 = vadd.f32 %v558_v29, %v514_v28 }
  0xb3   : > { %v587_v37 = vpop.f32.mrf.mxu1 }
  0xb4   : > { %v2364_v41 = vadd.f32 %v587_v37, %v559_v34 }
  0xb6   : > { %936 = vrot.lane.b32.xlu2 %v2364_v41, %s1939_s18  ;;  %957 = vrot.lane.b32.xlu0 %v2364_v41, %s1940_s23 }
  0xb7   : > { %871 = vrot.lane.b32.xlu1 %v2364_v41, %s1942_s12  ;;  %v964_v2 = vpop.permute.xlu1 %963 }
  0xb8   : > { %v967_v48 = vsel %vm965_vm1, %v960_v0, %v964_v2  ;;  %v969_v52 = vsel %vm965_vm1, %v964_v2, %v960_v0 }
  0xb9   : > { %v2408_v6 = vpop.permute.xlu0 %917  ;;  %v974_v14 = vmul.f32 %v2438_v43, %v967_v48  ;;  %v975_v23 = vmul.f32 %v2441_v44, %v969_v52 }
  0xba   : > { %v925_v2 = vsel %vm923_vm3, %v2408_v6, %v2410_v7 }
  0xbb   : > { %v977_v62 = vpack.c.bf16 %v975_v23, %v974_v14 }
  0xbd   : > { %v620_v46 = vpop.f32.mrf.mxu2  ;;  %v681_v49 = vpop.f32.mrf.mxu3  ;;  %v1073_v28 = vunpack.c.l.b16 %v977_v62  ;;  %v1074_v34 = vunpack.c.h.b16 %v977_v62 }
  0xbe   : > { %915 = vrot.lane.b32.xlu2 %v2364_v41, %s1941_s11  ;;  %892 = vrot.lane.b32.xlu0 %v2364_v41, %s1943_s13  ;;  %v682_v50 = vadd.f32 %v681_v49, %v620_v46 }
  0xbf   : > { %v943_v8 = vpop.permute.xlu1 %942 }
  0xc0   : > { %v719_v51 = vpop.f32.mrf.mxu0  ;;  %v946_v15 = vsel %vm944_vm2, %v939_v1, %v943_v8  ;;  %v948_v24 = vsel %vm944_vm2, %v943_v8, %v939_v1  ;;  %v927_v8 = vsel %vm923_vm3, %v2410_v7, %v2408_v6 }
  0xc1   : > { %v720_v53 = vadd.f32 %v719_v51, %v682_v50  ;;  %v2412_v12 = vpop.permute.xlu0 %898  ;;  %v953_v16 = vmul.f32 %v2457_v56, %v946_v15  ;;  %v954_v25 = vmul.f32 %v2460_v61, %v948_v24  ;;  %v1043_v15 = vunpack.c.l.b16 %v2504_v32 }
  0xc2   : > { %v1044_v24 = vunpack.c.h.b16 %v2504_v32 }
  0xc3   : > { %v956_v37 = vpack.c.bf16 %v954_v25, %v953_v16 }
  0xc4   : > { %v750_v54 = vpop.f32.mrf.mxu1 }
  0xc5   : > { %v751_v57 = vadd.f32 %v750_v54, %v720_v53  ;;  %v1063_v0 = vunpack.c.l.b16 %v956_v37  ;;  %v1064_v1 = vunpack.c.h.b16 %v956_v37  ;;  %v2561_v37 = vperm.slane %v2429_v40, 2 }
  0xc6   : > { %v795_v58 = vpop.f32.mrf.mxu2  ;;  %850 = vrot.lane.b32.xlu2 %v2364_v41, %s1944_s14 }
  0xc7   : > { %v796_v59 = vadd.f32 %v795_v58, %v751_v57  ;;  %v2416_v22 = vpop.permute.xlu1 %894 }
  0xc8   : > { %v824_v60 = vpop.f32.mrf.mxu3  ;;  %v902_v14 = vsel %vm900_vm4, %v2416_v22, %v2412_v12  ;;  %v904_v6 = vsel %vm900_vm4, %v2412_v12, %v2416_v22 }
  0xc9   : > { %v2378_v63 = vadd.f32 %v824_v60, %v796_v59  ;;  %v2418_v30 = vpop.permute.xlu0 %852  ;;  %v2488_v59 = vperm.slane %v2429_v40, 5  ;;  %v2491_v60 = vperm.slane %v2434_v42, 5 }
  0xcb   : > { %961 = vrot.lane.b32.xlu1 %v2378_v63, %s1940_s23  ;;  %940 = vrot.lane.b32.xlu0 %v2378_v63, %s1939_s18  ;;  %v933_v7 = vmul.f32 %v2491_v60, %v927_v8 }
  0xce   : > { %896 = vrot.lane.b32.xlu2 %v2378_v63, %s1943_s13 }
  0xcf   : > { %v2422_v33 = vpop.permute.xlu1 %877 }
  0xd3   : > { %829 = vrot.lane.b32.xlu1 %v2121_v35, %s1945_s15  ;;  %827 = vrot.lane.b32.xlu0 %v2364_v41, %s1945_s15 }
  0xd6   : > { %831 = vrot.lane.b32.xlu2 %v2378_v63, %s1945_s15 }
  0xdb   : > { %919 = vrot.lane.b32.xlu1 %v2378_v63, %s1941_s11  ;;  %875 = vrot.lane.b32.xlu0 %v2378_v63, %s1942_s12 }
  0xde   : > { %980 = vrot.lane.b32.xlu2 %v2121_v35, %s1946_s16  ;;  %v913_v35 = vpack.c.bf16 %v2378_v63, %v2364_v41 }
  0xe3   : > { %978 = vrot.lane.b32.xlu1 %v2364_v41, %s1946_s16  ;;  %833 = vrot.lane.b32.xlu0 %v2334_v9, %s1945_s15 }
  0xeb   : > { %854 = vrot.lane.b32.xlu1 %v2378_v63, %s1944_s14  ;;  %982 = vrot.lane.b32.xlu0 %v2378_v63, %s1946_s16 }
  0xf3   : > { %984 = vrot.lane.b32.xlu1 %v2334_v9, %s1946_s16  ;;  %v932_v9 = vmul.f32 %v2488_v59, %v925_v2 }
 0x110   : > { %v937_v38 = vpop.permute.xlu2 %936 }
 0x118   : > { %v2452_v55 = vpop.permute.xlu2 %915 }
 0x120   : > { %v2480_v29 = vpop.permute.xlu2 %850 }
 0x128   : > { %v958_v36 = vpop.permute.xlu0 %957  ;;  %v897_v23 = vpop.permute.xlu2 %896 }
 0x129   : > { %v2443_v45 = vpop.permute.xlu1 %871 }
 0x130   : > { %v2445_v47 = vpop.permute.xlu0 %892 }
 0x131   : > { %v901_v22 = vsel %vm900_vm4, %v2445_v47, %v897_v23  ;;  %v903_v16 = vsel %vm900_vm4, %v897_v23, %v2445_v47 }
 0x13d   : > { %v962_v3 = vpop.permute.xlu1 %961  ;;  %v941_v18 = vpop.permute.xlu0 %940 }
 0x13e   : > { %v966_v4 = vsel %vm965_vm1, %v958_v36, %v962_v3  ;;  %v968_v26 = vsel %vm965_vm1, %v962_v3, %v958_v36  ;;  %v945_v19 = vsel %vm944_vm2, %v937_v38, %v941_v18  ;;  %v947_v5 = vsel %vm944_vm2, %v941_v18, %v937_v38 }
 0x13f   : > { %v972_v10 = vmul.f32 %v2438_v43, %v966_v4  ;;  %v973_v11 = vmul.f32 %v2441_v44, %v968_v26  ;;  %v951_v17 = vmul.f32 %v2457_v56, %v945_v19  ;;  %v952_v20 = vmul.f32 %v2460_v61, %v947_v5 }
 0x140   : > { %v2507_v36 = vperm.slane %v2429_v40, 3  ;;  %v2510_v38 = vperm.slane %v2434_v42, 3  ;;  %v1041_v26 = vunpack.c.l.b16 %v913_v35  ;;  %v1042_v19 = vunpack.c.h.b16 %v913_v35  ;;  %v2591_v35 = vld [vmem:[%s2856_s7] sm:$0xff] }
 0x141   : > { %v976_v21 = vpack.c.bf16 %v973_v11, %v972_v10  ;;  %v955_v27 = vpack.c.bf16 %v952_v20, %v951_v17  ;;  %v935_v5 = vpack.c.bf16 %v933_v7, %v932_v9  ;;  %v2542_v10 = vperm.slane %v2429_v40, 1 }
 0x142   : > { %v909_v62 = vmul.f32 %v2507_v36, %v904_v6  ;;  %v910_v12 = vmul.f32 %v2510_v38, %v902_v14  ;;  %v2547_v17 = vperm.slane %v2434_v42, 1  ;;  %v860_v20 = vsel %vm858_vm5, %v2418_v30, %v2420_v31 }
 0x143   : > { %v1071_v46 = vunpack.c.l.b16 %v976_v21  ;;  %v1072_v49 = vunpack.c.h.b16 %v976_v21  ;;  %v1061_v57 = vunpack.c.l.b16 %v955_v27  ;;  %v1062_v58 = vunpack.c.h.b16 %v955_v27 }
 0x144   : > { %v908_v21 = vmul.f32 %v2510_v38, %v901_v22  ;;  %v912_v27 = vpack.c.bf16 %v910_v12, %v909_v62  ;;  %v1947_v6 = vmov 0   ;;  %v1045_v9 = vpack.c.b16 %v1043_v15, %v1041_v26  ;;  %v832_v15 = vpop.permute.xlu2 %831 }
 0x145   : > { %v2483_v50 = vpop.permute.xlu1 %829  ;;  %v2485_v51 = vpop.permute.xlu0 %827  ;;  %v1075_v53 = vpack.c.b16 %v1073_v28, %v1071_v46  ;;  %v1076_v54 = vpack.c.b16 %v1074_v34, %v1072_v49  ;;  %v1065_v48 = vpack.c.b16 %v1063_v0, %v1061_v57  ;;  %v1066_v52 = vpack.c.b16 %v1064_v1, %v1062_v58  ;;  %v2575_v58 = vld [vmem:[%s2856_s7 + $0x8] sm:$0xff]  ;;  %1904 = vset.pattern.permute.xlu0 %v1947_v6 }
 0x146   : > { %v862_v28 = vsel %vm858_vm5, %v2420_v31, %v2418_v30  ;;  %v2564_v46 = vperm.slane %v2434_v42, 2  ;;  %v1053_v57 = vunpack.c.l.b16 %v935_v5  ;;  %v1054_v31 = vunpack.c.h.b16 %v935_v5  ;;  %1098 = vperm.xlu0 %1904, %v2575_v58   ;;  %1903 = vset.pattern.permute.xlu2 %v1947_v6 }
 0x147   : > { %1114 = vmatpush.bf16.msrb.mxu0 %v1075_v53  ;;  %1142 = vmatpush.bf16.msrb.mxu2 %v1076_v54  ;;  %v881_v0 = vsel %vm879_vm6, %v2414_v13, %v2422_v33  ;;  %v883_v1 = vsel %vm879_vm6, %v2422_v33, %v2414_v13  ;;  %v1046_v7 = vpack.c.b16 %v1044_v24, %v1042_v19 }
 0x148   : > { %v888_v13 = vmul.f32 %v2561_v37, %v883_v1  ;;  %v889_v33 = vmul.f32 %v2564_v46, %v881_v0  ;;  %v867_v23 = vmul.f32 %v2542_v10, %v862_v28  ;;  %v868_v62 = vmul.f32 %v2547_v17, %v860_v20  ;;  %1093 = vperm.xlu2 %1903, %v2591_v35  }
 0x149   : > { %1905 = vset.pattern.permute.xlu1 %v1947_v6  ;;  %v840_v24 = vsel %vm837_vm7, %v832_v15, %v2485_v51  ;;  %v838_v5 = vsel %vm837_vm7, %v2485_v51, %v832_v15 }
 0x14b   : > { %1115 = vmatpush.bf16.msrb.mxu0 %v1065_v48  ;;  %1143 = vmatpush.bf16.msrb.mxu2 %v1066_v52 }
 0x14d   : > { %v920_v25 = vpop.permute.xlu1 %919  ;;  %v876_v3 = vpop.permute.xlu0 %875 }
 0x14e   : > { %v924_v18 = vsel %vm923_vm3, %v2452_v55, %v920_v25  ;;  %v926_v4 = vsel %vm923_vm3, %v920_v25, %v2452_v55  ;;  %v907_v55 = vmul.f32 %v2507_v36, %v903_v16  ;;  %v880_v49 = vsel %vm879_vm6, %v2443_v45, %v876_v3 }
 0x14f   : > { %v930_v11 = vmul.f32 %v2488_v59, %v924_v18  ;;  %v931_v47 = vmul.f32 %v2491_v60, %v926_v4  ;;  %v882_v53 = vsel %vm879_vm6, %v876_v3, %v2443_v45  ;;  %v887_v8 = vmul.f32 %v2564_v46, %v880_v49 }
 0x150   : > { %v911_v45 = vpack.c.bf16 %v908_v21, %v907_v55  ;;  %v886_v2 = vmul.f32 %v2561_v37, %v882_v53  ;;  %v2603_v16 = vperm.slane %v2429_v40, 0  ;;  %v1033_v3 = vunpack.c.l.b16 %v912_v27 }
 0x151   : > { %v934_v34 = vpack.c.bf16 %v931_v47, %v930_v11  ;;  %v1034_v18 = vunpack.c.h.b16 %v912_v27  ;;  %v2606_v4 = vperm.slane %v2434_v42, 0  ;;  %v891_v40 = vpack.c.bf16 %v889_v33, %v888_v13 }
 0x152   : > { %v1031_v12 = vunpack.c.l.b16 %v911_v45  ;;  %v1032_v22 = vunpack.c.h.b16 %v911_v45  ;;  %v890_v25 = vpack.c.bf16 %v887_v8, %v886_v2  ;;  %v870_v42 = vpack.c.bf16 %v868_v62, %v867_v23  ;;  %v981_v23 = vpop.permute.xlu2 %980 }
 0x153   : > { %v1051_v54 = vunpack.c.l.b16 %v934_v34  ;;  %v1052_v30 = vunpack.c.h.b16 %v934_v34  ;;  %v844_v20 = vmul.f32 %v2603_v16, %v840_v24  ;;  %v845_v34 = vmul.f32 %v2606_v4, %v838_v5 }
 0x154   : > { %v1035_v11 = vpack.c.b16 %v1033_v3, %v1031_v12  ;;  %v1036_v47 = vpack.c.b16 %v1034_v18, %v1032_v22  ;;  %v1021_v28 = vunpack.c.l.b16 %v890_v25  ;;  %v1022_v53 = vunpack.c.h.b16 %v890_v25 }
 0x155   : > { %v979_v32 = vpop.permute.xlu1 %978  ;;  %v834_v48 = vpop.permute.xlu0 %833  ;;  %v1055_v52 = vpack.c.b16 %v1053_v57, %v1051_v54  ;;  %v1056_v14 = vpack.c.b16 %v1054_v31, %v1052_v30  ;;  %v2636_v30 = vld [vmem:[%s2852_s3 + $0x10] ss:$0 sm:$0xff]  ;;  %v2641_v31 = vld [vmem:[%s2852_s3 + $0x18] ss:$0 sm:$0xff]  ;;  %v1023_v0 = vunpack.c.l.b16 %v891_v40  ;;  %v1024_v45 = vunpack.c.h.b16 %v891_v40 }
 0x156   : > { %v839_v26 = vsel %vm837_vm7, %v2483_v50, %v834_v48  ;;  %v841_v19 = vsel %vm837_vm7, %v834_v48, %v2483_v50  ;;  %v1014_v13 = vunpack.c.h.b16 %v870_v42 }
 0x157   : > { %1116 = vmatpush.bf16.msrb.mxu0 %v1055_v52  ;;  %1144 = vmatpush.bf16.msrb.mxu2 %v1056_v14  ;;  %v846_v55 = vmul.f32 %v2603_v16, %v841_v19  ;;  %v847_v21 = vmul.f32 %v2606_v4, %v839_v26  ;;  %v1025_v48 = vpack.c.b16 %v1023_v0, %v1021_v28 }
 0x158   : > { %v848_v52 = vpack.c.bf16 %v845_v34, %v844_v20  ;;  %v1026_v14 = vpack.c.b16 %v1024_v45, %v1022_v53  ;;  %v1830_v53 = vld [vmem:[%s2853_s4 + $0x8] sm:$0xf0] }
 0x159   : > { %v849_v2 = vpack.c.bf16 %v847_v21, %v846_v55 }
 0x15a   : > { %v1001_v5 = vunpack.c.l.b16 %v848_v52 }
 0x15b   : > { %1117 = vmatpush.bf16.msrb.mxu0 %v1045_v9  ;;  %1145 = vmatpush.bf16.msrb.mxu2 %v1046_v7  ;;  %v1013_v9 = vunpack.c.l.b16 %v870_v42  ;;  %v1003_v25 = vunpack.c.l.b16 %v849_v2  ;;  %v1004_v24 = vunpack.c.h.b16 %v849_v2  ;;  %v1828_v42 = vld [vmem:[%s2853_s4] sm:$0xf] }
 0x15d   : > { %v855_v27 = vpop.permute.xlu1 %854  ;;  %v983_v50 = vpop.permute.xlu0 %982  ;;  %v1005_v55 = vpack.c.b16 %v1003_v25, %v1001_v5 }
 0x15e   : > { %v859_v51 = vsel %vm858_vm5, %v2480_v29, %v855_v27  ;;  %v861_v49 = vsel %vm858_vm5, %v855_v27, %v2480_v29  ;;  %v987_v29 = vsel %vm986_vm8, %v979_v32, %v983_v50  ;;  %v989_v1 = vsel %vm986_vm8, %v983_v50, %v979_v32 }
 0x15f   : > { %v865_v54 = vmul.f32 %v2542_v10, %v861_v49  ;;  %v866_v57 = vmul.f32 %v2547_v17, %v859_v51  ;;  %1118 = vmatpush.bf16.msrb.mxu0 %v1035_v11  ;;  %1146 = vmatpush.bf16.msrb.mxu2 %v1036_v47  ;;  %v993_v33 = vmul.f32 %v2636_v30, %v987_v29  ;;  %v1845_v11 = vld [vmem:[%s2853_s4 + $0x4] sm:$0xf0]  ;;  %v1002_v47 = vunpack.c.h.b16 %v848_v52  ;;  %v1844_v49 = vld [vmem:[%s2853_s4 + $0x4] sm:$0xf] }
 0x160   : > { %v994_v7 = vmul.f32 %v2641_v31, %v989_v1  ;;  %v1829_v27 = vor.u32 %v1845_v11, %v1828_v42  ;;  %v1833_v0 = vor.u32 %v1844_v49, %v1830_v53 }
 0x161   : > { %v869_v8 = vpack.c.bf16 %v866_v57, %v865_v54  ;;  %v1006_v21 = vpack.c.b16 %v1004_v24, %v1002_v47 }
 0x162   : > { %v997_v26 = vpack.c.bf16 %v994_v7, %v993_v33 }
 0x163   : > { %1119 = vmatpush.bf16.msrb.mxu0 %v1025_v48  ;;  %v1011_v62 = vunpack.c.l.b16 %v869_v8  ;;  %v1012_v12 = vunpack.c.h.b16 %v869_v8  ;;  %1147 = vmatpush.bf16.msrb.mxu2 %v1026_v14 }
 0x164   : > { %v1081_v50 = vunpack.c.l.b16 %v997_v26  ;;  %v1082_v28 = vunpack.c.h.b16 %v997_v26 }
 0x165   : > { %v985_v22 = vpop.permute.xlu1 %984  ;;  %v1015_v32 = vpack.c.b16 %v1013_v9, %v1011_v62  ;;  %v1016_v15 = vpack.c.b16 %v1014_v13, %v1012_v12 }
 0x166   : > { %v988_v3 = vsel %vm986_vm8, %v981_v23, %v985_v22  ;;  %v990_v18 = vsel %vm986_vm8, %v985_v22, %v981_v23 }
 0x167   : > { %v995_v19 = vmul.f32 %v2636_v30, %v988_v3  ;;  %v996_v40 = vmul.f32 %v2641_v31, %v990_v18  ;;  %1120 = vmatpush.bf16.msrb.mxu0 %v1015_v32  ;;  %1148 = vmatpush.bf16.msrb.mxu2 %v1016_v15 }
 0x169   : > { %v998_v20 = vpack.c.bf16 %v996_v40, %v995_v19 }
 0x16b   : > { %v1083_v34 = vunpack.c.l.b16 %v998_v20  ;;  %v1084_v51 = vunpack.c.h.b16 %v998_v20  ;;  %1121 = vmatpush.bf16.msrb.mxu0 %v1005_v55  ;;  %1149 = vmatpush.bf16.msrb.mxu2 %v1006_v21 }
 0x16d   : > { %v1085_v54 = vpack.c.b16 %v1083_v34, %v1081_v50  ;;  %v1086_v57 = vpack.c.b16 %v1084_v51, %v1082_v28 }
 0x16e   : > { %1122 = vmatmul.bf16.vlgmr.msrb.gmra.mxu0 %v1829_v27  ;;  %1150 = vmatmul.bf16.vlgmr.msrb.gmra.mxu2 %v1829_v27 }
 0x16f   : > { %1135 = vmatpush.bf16.msrb.mxu1 %v1085_v54  ;;  %1163 = vmatpush.bf16.msrb.mxu3 %v1086_v57 }
 0x172   : > { %1834 = vmatmul.msk.bf16.vlgmr.msrb.gmra.mxu1 %vm1110_vm9, %v1833_v0  ;;  %1835 = vmatmul.msk.bf16.vlgmr.msrb.gmra.mxu3 %vm1110_vm9, %v1833_v0 }
 0x1a2   : > { %v1094_v29 = vpop.permute.xlu2 %1093 }
 0x1b8   : > { %v1099_v13 = vpop.permute.xlu0 %1098 }
 0x1eb   : > { %v1123_v1 = vpop.f32.mrf.mxu0 }
 0x1ec   : > { %v1124_v45 = vadd.f32 %v1123_v1, %v1094_v29 }
 0x1ef   : > { %v1137_v2 = vpop.f32.mrf.mxu1 }
 0x1f0   : > { %v2669_v52 = vadd.f32 %v1137_v2, %v1124_v45 }
 0x1f1   : > { %v1151_v8 = vpop.f32.mrf.mxu2 }
 0x1f2   : > { %v1152_v48 = vadd.f32 %v1151_v8, %v1094_v29 }
 0x1f3   : > { %v1125_v7 = vpop.f32.mrf.mxu0 }
 0x1f4   : > { %v1126_v12 = vadd.f32 %v1125_v7, %v1099_v13 }
 0x1f5   : > { %v1165_v14 = vpop.f32.mrf.mxu3 }
 0x1f6   : > { %v2671_v9 = vadd.f32 %v1165_v14, %v1152_v48 }
 0x1f7   : > { %v1139_v62 = vpop.f32.mrf.mxu1 }
 0x1f8   : > { %v1170_v33 = vadd.f32 %v2671_v9, %v2669_v52  ;;  %v2675_v15 = vadd.f32 %v1139_v62, %v1126_v12 }
 0x1f9   : > { %v1153_v23 = vpop.f32.mrf.mxu2 }
 0x1fa   : > { %1171 = vadd.xlane.f32.xlu1 %v1170_v33  ;;  %v1154_v22 = vadd.f32 %v1153_v23, %v1099_v13 }
 0x1fd   : > { %v1167_v32 = vpop.f32.mrf.mxu3 }
 0x1fe   : > { %v2677_v25 = vadd.f32 %v1167_v32, %v1154_v22 }
 0x200   : > { %v1173_v3 = vadd.f32 %v2677_v25, %v2675_v15 }
 0x202   : > { %1174 = vadd.xlane.f32.xlu2 %v1173_v3 }
 0x26d   : > { %v1172_v18 = vpop.xlane.xlu1 %1171 }
 0x26e   : > { %v1190_v24 = vrot.slane %v1172_v18, 4  ;;  %v1177_v26 = vsel %vm1176_vm10, %v1172_v18, 0.0 }
 0x26f   : > { %1178 = vadd.xlane.f32.xlu0 %v1177_v26 }
 0x270   : > { %v1192_v19 = vsel %vm1176_vm10, %v1190_v24, 0.0 }
 0x271   : > { %1193 = vadd.xlane.f32.xlu2 %v1192_v19 }
 0x275   : > { %v1175_v40 = vpop.xlane.xlu2 %1174 }
 0x276   : > { %v1217_v5 = vrot.slane %v1175_v40, 4  ;;  %v1204_v42 = vsel %vm1176_vm10, %v1175_v40, 0.0 }
 0x277   : > { %1205 = vadd.xlane.f32.xlu1 %v1204_v42 }
 0x278   : > { %v1219_v11 = vsel %vm1176_vm10, %v1217_v5, 0.0 }
 0x279   : > { %1220 = vadd.xlane.f32.xlu2 %v1219_v11 }
 0x2e2   : > { %v1179_v47 = vpop.xlane.xlu0 %1178 }
 0x2e3   : > { %v1180_v20 = vrot.slane %v1179_v47, 4 }
 0x2e4   : > { %v1194_v55 = vpop.xlane.xlu2 %1193 }
 0x2e5   : > { %v1181_v21 = vadd.f32 %v1180_v20, %v1179_v47  ;;  %v1195_v27 = vrot.slane %v1194_v55, 4 }
 0x2e7   : > { %v1182_v50 = vrot.slane %v1181_v21, 2  ;;  %v1196_v28 = vadd.f32 %v1195_v27, %v1194_v55 }
 0x2e9   : > { %v1197_v34 = vrot.slane %v1196_v28, 2  ;;  %v1183_v51 = vadd.f32 %v1182_v50, %v1181_v21 }
 0x2ea   : > { %v1206_v49 = vpop.xlane.xlu1 %1205 }
 0x2eb   : > { %v1207_v53 = vrot.slane %v1206_v49, 4  ;;  %v1184_v54 = vrot.slane %v1183_v51, 1  ;;  %v1198_v57 = vadd.f32 %v1197_v34, %v1196_v28 }
 0x2ec   : > { %v1221_v0 = vpop.xlane.xlu2 %1220 }
 0x2ed   : > { %v1208_v29 = vadd.f32 %v1207_v53, %v1206_v49  ;;  %v1222_v1 = vrot.slane %v1221_v0, 4  ;;  %v1185_v45 = vadd.f32 %v1184_v54, %v1183_v51  ;;  %v1199_v2 = vrot.slane %v1198_v57, 1 }
 0x2ef   : > { %v1209_v8 = vrot.slane %v1208_v29, 2  ;;  %v1223_v48 = vadd.f32 %v1222_v1, %v1221_v0  ;;  %1846 = vpush %v1185_v45  ;;  %v1200_v14 = vadd.f32 %v1199_v2, %v1198_v57 }
 0x2f1   : > { %v1224_v13 = vrot.slane %v1223_v48, 2  ;;  %1848 = vpush %v1200_v14  ;;  %v1210_v33 = vadd.f32 %v1209_v8, %v1208_v29 }
 0x2f3   : > { %v1211_v7 = vrot.slane %v1210_v33, 1  ;;  %v1225_v23 = vadd.f32 %v1224_v13, %v1223_v48 }
 0x2f5   : > { %v1212_v62 = vadd.f32 %v1211_v7, %v1210_v33  ;;  %v1226_v12 = vrot.slane %v1225_v23, 1 }
 0x2f7   : > { %1850 = vpush %v1212_v62  ;;  %v1227_v22 = vadd.f32 %v1226_v12, %v1225_v23 }
 0x2f9   : > { %1852 = vpush %v1227_v22 }
 0x320   : > { %s1847_s9 = spop %1846 }
 0x321   : > { %v1187_v32 = vstv %s1847_s9 }
 0x322   : > { %s1849_s10 = spop %1848  ;;  %v1188_v18 = vmul.f32 0.0009765625, %v1187_v32 }
 0x323   : > { %v1202_v3 = vstv %s1849_s10 }
 0x324   : > { %v1203_v24 = vmul.f32 0.0009765625, %v1202_v3 }
 0x326   : > { %v1232_v26 = vsel %vm1231_vm11, %v1188_v18, %v1203_v24 }
 0x327   : > { %1236 = vperm.xlu1 %1905, %v1232_v26  }
 0x328   : > { %s1851_s17 = spop %1850 }
 0x329   : > { %v1214_v19 = vstv %s1851_s17 }
 0x32a   : > { %s1853_s19 = spop %1852  ;;  %v1215_v5 = vmul.f32 0.0009765625, %v1214_v19 }
 0x32b   : > { %v1229_v40 = vstv %s1853_s19 }
 0x32c   : > { %v1230_v42 = vmul.f32 0.0009765625, %v1229_v40 }
 0x32e   : > { %v1233_v11 = vsel %vm1231_vm11, %v1215_v5, %v1230_v42 }
 0x32f   : > { %1241 = vperm.xlu2 %1903, %v1233_v11  }
 0x389   : > { %v1242_v21 = vpop.permute.xlu2 %1241 }
 0x38a   : > { %v2698_v28 = vsub.f32 %v2675_v15, %v1242_v21  ;;  %v2701_v34 = vsub.f32 %v2677_v25, %v1242_v21 }
 0x399   : > { %v1237_v47 = vpop.permute.xlu1 %1236 }
 0x39a   : > { %v2688_v20 = vsub.f32 %v2669_v52, %v1237_v47  ;;  %v2691_v55 = vsub.f32 %v2671_v9, %v1237_v47  ;;  %v1250_v52 = vmul.f32 %v2698_v28, %v2698_v28  ;;  %v1251_v9 = vmul.f32 %v2701_v34, %v2701_v34 }
 0x39c   : > { %v1248_v27 = vmul.f32 %v2688_v20, %v2688_v20  ;;  %v1249_v50 = vmul.f32 %v2691_v55, %v2691_v55  ;;  %v1255_v49 = vadd.f32 %v1251_v9, %v1250_v52 }
 0x39e   : > { %v1252_v51 = vadd.f32 %v1249_v50, %v1248_v27 }
 0x3a0   : > { %1253 = vadd.xlane.f32.xlu0 %v1252_v51 }
 0x3a8   : > { %1256 = vadd.xlane.f32.xlu0 %v1255_v49 }
 0x413   : > { %v1254_v53 = vpop.xlane.xlu0 %1253 }
 0x414   : > { %v1271_v54 = vrot.slane %v1254_v53, 4  ;;  %v1258_v57 = vsel %vm1176_vm10, %v1254_v53, 0.0 }
 0x415   : > { %1259 = vadd.xlane.f32.xlu0 %v1258_v57 }
 0x416   : > { %v1273_v15 = vsel %vm1176_vm10, %v1271_v54, 0.0 }
 0x417   : > { %1274 = vadd.xlane.f32.xlu1 %v1273_v15 }
 0x41b   : > { %v1257_v25 = vpop.xlane.xlu0 %1256 }
 0x41c   : > { %v1298_v0 = vrot.slane %v1257_v25, 4  ;;  %v1285_v29 = vsel %vm1176_vm10, %v1257_v25, 0.0 }
 0x41d   : > { %1286 = vadd.xlane.f32.xlu2 %v1285_v29 }
 0x41e   : > { %v1300_v1 = vsel %vm1176_vm10, %v1298_v0, 0.0 }
 0x41f   : > { %1301 = vadd.xlane.f32.xlu0 %v1300_v1  ;;  %v1948_v1 = vmov 2  }
 0x420   : > { %1907 = vset.pattern.permute.xlu1 %v1948_v1 }
 0x430   : > { %1367 = vperm.xlu1 %1907, %v2575_v58  }
 0x488   : > { %v1260_v45 = vpop.xlane.xlu0 %1259 }
 0x489   : > { %v1261_v2 = vrot.slane %v1260_v45, 4 }
 0x48a   : > { %v1275_v8 = vpop.xlane.xlu1 %1274 }
 0x48b   : > { %v1262_v48 = vadd.f32 %v1261_v2, %v1260_v45  ;;  %v1276_v14 = vrot.slane %v1275_v8, 4 }
 0x48d   : > { %v1263_v13 = vrot.slane %v1262_v48, 2  ;;  %v1277_v33 = vadd.f32 %v1276_v14, %v1275_v8 }
 0x48f   : > { %v1278_v7 = vrot.slane %v1277_v33, 2  ;;  %v1264_v23 = vadd.f32 %v1263_v13, %v1262_v48 }
 0x490   : > { %v1287_v62 = vpop.xlane.xlu2 %1286 }
 0x491   : > { %v1288_v12 = vrot.slane %v1287_v62, 4  ;;  %v1265_v22 = vrot.slane %v1264_v23, 1  ;;  %v1279_v32 = vadd.f32 %v1278_v7, %v1277_v33 }
 0x492   : > { %v1302_v3 = vpop.xlane.xlu0 %1301 }
 0x493   : > { %v1289_v18 = vadd.f32 %v1288_v12, %v1287_v62  ;;  %v1303_v24 = vrot.slane %v1302_v3, 4  ;;  %v1266_v26 = vadd.f32 %v1265_v22, %v1264_v23  ;;  %v1280_v19 = vrot.slane %v1279_v32, 1 }
 0x494   : > { %v1949_v62 = vmov 1  }
 0x495   : > { %v1290_v40 = vrot.slane %v1289_v18, 2  ;;  %v1304_v5 = vadd.f32 %v1303_v24, %v1302_v3  ;;  %1854 = vpush %v1266_v26  ;;  %v1281_v42 = vadd.f32 %v1280_v19, %v1279_v32 }
 0x497   : > { %v1305_v11 = vrot.slane %v1304_v5, 2  ;;  %1856 = vpush %v1281_v42  ;;  %v1291_v47 = vadd.f32 %v1290_v40, %v1289_v18 }
 0x499   : > { %v1292_v21 = vrot.slane %v1291_v47, 1  ;;  %v1306_v27 = vadd.f32 %v1305_v11, %v1304_v5 }
 0x49b   : > { %v1293_v50 = vadd.f32 %v1292_v21, %v1291_v47  ;;  %v1307_v51 = vrot.slane %v1306_v27, 1 }
 0x49d   : > { %1858 = vpush %v1293_v50  ;;  %v1308_v52 = vadd.f32 %v1307_v51, %v1306_v27 }
 0x49f   : > { %1860 = vpush %v1308_v52 }
 0x4a2   : > { %v1368_v18 = vpop.permute.xlu1 %1367 }
 0x4c6   : > { %s1855_s20 = spop %1854 }
 0x4c7   : > { %v1268_v9 = vstv %s1855_s20 }
 0x4c8   : > { %s1857_s21 = spop %1856  ;;  %v1269_v53 = vmul.f32 0.0009765625, %v1268_v9 }
 0x4c9   : > { %v1283_v49 = vstv %s1857_s21  ;;  %s322_s21 = scalar_lea.vmem %s2857_s8, %s1821_s26 }
 0x4ca   : > { %v1284_v54 = vmul.f32 0.0009765625, %v1283_v49 }
 0x4cc   : > { %v2712_v57 = vsel %vm1231_vm11, %v1269_v53, %v1284_v54 }
 0x4ce   : > { %s1859_s22 = spop %1858 }
 0x4cf   : > { %v1295_v15 = vstv %s1859_s22 }
 0x4d0   : > { %s1861_s24 = spop %1860  ;;  %v1296_v0 = vmul.f32 0.0009765625, %v1295_v15 }
 0x4d1   : > { %v1310_v25 = vstv %s1861_s24 }
 0x4d2   : > { %v1311_v29 = vmul.f32 0.0009765625, %v1310_v25 }
 0x4d4   : > { %v1313_v45 = vsel %vm1231_vm11, %v1296_v0, %v1311_v29 }
 0x4d5   : > { %v1315_v2 = vadd.f32 1e-05, %v1313_v45 }
 0x4d7   : > { %1922 = vrsqrt.f32 %v1315_v2  ;;  %vm1332_vm13 = vweird.f32 %v1315_v2 }
 0x4dd   : > { %v1923_v8 = vpop.eup %1922 }
 0x4de   : > { %v1327_v48 = vmul.f32 %v1923_v8, %v1315_v2  ;;  %vm1333_vm12 = vweird.f32 %v1923_v8 }
 0x4df   : > { %vm1334_vm14 = vmor %vm1332_vm13, %vm1333_vm12 }
 0x4e0   : > { %v1328_v14 = vmul.f32 %v1923_v8, %v1327_v48 }
 0x4e2   : > { %v1329_v13 = vmul.f32 0.5, %v1328_v14 }
 0x4e4   : > { %v1330_v33 = vsub.f32 1.5, %v1329_v13 }
 0x4e6   : > { %v1331_v7 = vmul.f32 %v1923_v8, %v1330_v33 }
 0x4e8   : > { %v1335_v23 = vsel %vm1334_vm14, %v1923_v8, %v1331_v7 }
 0x4e9   : > { %1343 = vperm.xlu0 %1904, %v1335_v23  }
 0x4f1   : > { %1906 = vset.pattern.permute.xlu0 %v1949_v62 }
 0x4f2   : > { %1355 = vperm.xlu0 %1906, %v2575_v58  }
 0x4fa   : > { %1910 = vset.pattern.permute.xlu0 %v1947_v6 }
 0x55b   : > { %v1344_v12 = vpop.permute.xlu0 %1343 }
 0x55c   : > { %v1348_v22 = vmul.f32 %v1344_v12, %v2698_v28  ;;  %v1349_v32 = vmul.f32 %v1344_v12, %v2701_v34  ;;  %v1950_v12 = vmov 3  }
 0x55d   : > { %1908 = vset.pattern.permute.xlu1 %v1950_v12 }
 0x564   : > { %v1356_v3 = vpop.permute.xlu0 %1355 }
 0x565   : > { %v1360_v24 = vmul.f32 %v1356_v3, %v1348_v22  ;;  %v1361_v26 = vmul.f32 %v1356_v3, %v1349_v32 }
 0x567   : > { %v1372_v19 = vadd.f32 %v1368_v18, %v1360_v24  ;;  %v1373_v40 = vadd.f32 %v1368_v18, %v1361_v26 }
 0x569   : > { %v1376_v5 = vmax.f32 %v1372_v19, 0.0  ;;  %v1377_v42 = vmax.f32 %v1373_v40, 0.0 }
 0x56b   : > { %1436 = vrot.lane.b32.xlu0 %v1377_v42, %s1946_s16  ;;  %1426 = vrot.lane.b32.xlu1 %v1376_v5, %s1940_s23 }
 0x56c   : > { %1434 = vrot.lane.b32.xlu2 %v1376_v5, %s1946_s16 }
 0x573   : > { %1412 = vrot.lane.b32.xlu1 %v1377_v42, %s1941_s11  ;;  %1418 = vrot.lane.b32.xlu0 %v1376_v5, %s1939_s18 }
 0x574   : > { %1428 = vrot.lane.b32.xlu2 %v1377_v42, %s1940_s23 }
 0x57b   : > { %1402 = vrot.lane.b32.xlu1 %v1376_v5, %s1943_s13  ;;  %1420 = vrot.lane.b32.xlu0 %v1377_v42, %s1939_s18 }
 0x57c   : > { %1394 = vrot.lane.b32.xlu2 %v1376_v5, %s1942_s12 }
 0x583   : > { %1380 = vrot.lane.b32.xlu1 %v1377_v42, %s1945_s15  ;;  %1410 = vrot.lane.b32.xlu0 %v1376_v5, %s1941_s11 }
 0x584   : > { %1404 = vrot.lane.b32.xlu2 %v1377_v42, %s1943_s13 }
 0x58b   : > { %1396 = vrot.lane.b32.xlu0 %v1377_v42, %s1942_s12  ;;  %1454 = vperm.xlu1 %1908, %v2591_v35  }
 0x58c   : > { %1386 = vrot.lane.b32.xlu2 %v1376_v5, %s1944_s14 }
 0x593   : > { %1378 = vrot.lane.b32.xlu0 %v1376_v5, %s1945_s15  ;;  %1909 = vset.pattern.permute.xlu1 %v1947_v6 }
 0x59b   : > { %1388 = vrot.lane.b32.xlu0 %v1377_v42, %s1944_s14 }
 0x5c6   : > { %v1435_v58 = vpop.permute.xlu2 %1434 }
 0x5ce   : > { %v1429_v53 = vpop.permute.xlu2 %1428 }
 0x5d6   : > { %v1395_v48 = vpop.permute.xlu2 %1394 }
 0x5dd   : > { %v1437_v28 = vpop.permute.xlu0 %1436  ;;  %v1427_v9 = vpop.permute.xlu1 %1426 }
 0x5de   : > { %v1438_v34 = vsel %vm986_vm8, %v1435_v58, %v1437_v28  ;;  %v1439_v11 = vsel %vm986_vm8, %v1437_v28, %v1435_v58  ;;  %v1430_v54 = vsel %vm965_vm1, %v1427_v9, %v1429_v53  ;;  %v1431_v15 = vsel %vm965_vm1, %v1429_v53, %v1427_v9  ;;  %v1405_v32 = vpop.permute.xlu2 %1404 }
 0x5df   : > { %v1440_v47 = vmul.f32 %v2636_v30, %v1438_v34  ;;  %v1441_v21 = vmul.f32 %v2641_v31, %v1439_v11  ;;  %v1432_v0 = vmul.f32 %v1430_v54, %v2438_v43  ;;  %v1433_v29 = vmul.f32 %v1431_v15, %v2441_v44 }
 0x5e1   : > { %v1450_v27 = vpack.c.bf16 %v1440_v47, %v1440_v47  ;;  %v1451_v50 = vpack.c.bf16 %v1441_v21, %v1441_v21 }
 0x5e3   : > { %v1462_v51 = vsel %vm1231_vm11, %v1450_v27, 0  ;;  %v1465_v52 = vsel %vm1231_vm11, %v1451_v50, 0 }
 0x5e4   : > { %1470 = vmatpush.bf16.msra.mxu1 %v1462_v51  ;;  %1483 = vmatpush.bf16.msra.mxu3 %v1465_v52 }
 0x5e5   : > { %v1419_v49 = vpop.permute.xlu0 %1418  ;;  %v1413_v45 = vpop.permute.xlu1 %1412 }
 0x5e6   : > { %v1387_v47 = vpop.permute.xlu2 %1386 }
 0x5ed   : > { %v1421_v30 = vpop.permute.xlu0 %1420 }
 0x5ee   : > { %v1422_v31 = vsel %vm944_vm2, %v1419_v49, %v1421_v30  ;;  %v1423_v25 = vsel %vm944_vm2, %v1421_v30, %v1419_v49  ;;  %v1452_v49 = vld [vmem:[%s2854_s5] sm:$0xf] }
 0x5ef   : > { %v1424_v2 = vmul.f32 %v1422_v31, %v2457_v56  ;;  %v1425_v8 = vmul.f32 %v1423_v25, %v2460_v61  ;;  %v1403_v56 = vpop.permute.xlu1 %1402 }
 0x5f0   : > { %v1406_v3 = vsel %vm900_vm4, %v1403_v56, %v1405_v32  ;;  %v1407_v18 = vsel %vm900_vm4, %v1405_v32, %v1403_v56 }
 0x5f1   : > { %v1448_v14 = vpack.c.bf16 %v1432_v0, %v1424_v2  ;;  %v1449_v13 = vpack.c.bf16 %v1433_v29, %v1425_v8  ;;  %v1408_v26 = vmul.f32 %v1407_v18, %v2507_v36  ;;  %v1409_v19 = vmul.f32 %v1406_v3, %v2510_v38 }
 0x5f3   : > { %1471 = vmatpush.bf16.msra.mxu1 %v1448_v14  ;;  %1484 = vmatpush.bf16.msra.mxu3 %v1449_v13 }
 0x5f5   : > { %v1411_v33 = vpop.permute.xlu0 %1410 }
 0x5f6   : > { %v1414_v7 = vsel %vm923_vm3, %v1411_v33, %v1413_v45  ;;  %v1415_v23 = vsel %vm923_vm3, %v1413_v45, %v1411_v33 }
 0x5f7   : > { %v1416_v43 = vmul.f32 %v1414_v7, %v2488_v59  ;;  %v1417_v44 = vmul.f32 %v1415_v23, %v2491_v60  ;;  %v1381_v34 = vpop.permute.xlu1 %1380 }
 0x5f9   : > { %v1446_v61 = vpack.c.bf16 %v1416_v43, %v1376_v5  ;;  %v1447_v22 = vpack.c.bf16 %v1417_v44, %v1377_v42 }
 0x5fb   : > { %1472 = vmatpush.bf16.msra.mxu1 %v1446_v61  ;;  %1485 = vmatpush.bf16.msra.mxu3 %v1447_v22 }
 0x5fd   : > { %v1397_v24 = vpop.permute.xlu0 %1396 }
 0x5fe   : > { %v1398_v59 = vsel %vm879_vm6, %v1395_v48, %v1397_v24  ;;  %v1399_v60 = vsel %vm879_vm6, %v1397_v24, %v1395_v48  ;;  %vm1637_vm6 = vcmask 1024  }
 0x5ff   : > { %v1400_v40 = vmul.f32 %v1399_v60, %v2561_v37  ;;  %v1401_v5 = vmul.f32 %v1398_v59, %v2564_v46  ;;  %v1455_v53 = vpop.permute.xlu1 %1454 }
 0x601   : > { %v1444_v42 = vpack.c.bf16 %v1408_v26, %v1400_v40  ;;  %v1445_v58 = vpack.c.bf16 %v1409_v19, %v1401_v5  ;;  %v1314_v5 = vadd.f32 1e-05, %v2712_v57 }
 0x603   : > { %1473 = vmatpush.bf16.msra.mxu1 %v1444_v42  ;;  %1486 = vmatpush.bf16.msra.mxu3 %v1445_v58  ;;  %1924 = vrsqrt.f32 %v1314_v5  ;;  %vm1322_vm1 = vweird.f32 %v1314_v5 }
 0x605   : > { %v1379_v28 = vpop.permute.xlu0 %1378 }
 0x606   : > { %v1382_v11 = vsel %vm837_vm7, %v1379_v28, %v1381_v34  ;;  %v1383_v36 = vsel %vm837_vm7, %v1381_v34, %v1379_v28  ;;  %vm1665_vm7 = vcmask 1041408  }
 0x607   : > { %v1384_v21 = vmul.f32 %v1383_v36, %v2603_v16  ;;  %v1385_v27 = vmul.f32 %v1382_v11, %v2606_v4 }
 0x609   : > { %v1925_v28 = vpop.eup %1924 }
 0x60a   : > { %v1317_v11 = vmul.f32 %v1925_v28, %v1314_v5  ;;  %vm1323_vm0 = vweird.f32 %v1925_v28 }
 0x60b   : > { %vm1324_vm2 = vmor %vm1322_vm1, %vm1323_vm0 }
 0x60c   : > { %v1318_v36 = vmul.f32 %v1925_v28, %v1317_v11 }
 0x60d   : > { %v1389_v38 = vpop.permute.xlu0 %1388 }
 0x60e   : > { %v1390_v37 = vsel %vm858_vm5, %v1387_v47, %v1389_v38  ;;  %v1391_v46 = vsel %vm858_vm5, %v1389_v38, %v1387_v47  ;;  %v1319_v47 = vmul.f32 0.5, %v1318_v36 }
 0x60f   : > { %v1392_v50 = vmul.f32 %v1391_v46, %v2542_v10  ;;  %v1393_v51 = vmul.f32 %v1390_v37, %v2547_v17 }
 0x610   : > { %v1320_v38 = vsub.f32 1.5, %v1319_v47 }
 0x611   : > { %v1442_v52 = vpack.c.bf16 %v1392_v50, %v1384_v21  ;;  %v1443_v9 = vpack.c.bf16 %v1393_v51, %v1385_v27 }
 0x612   : > { %v1321_v37 = vmul.f32 %v1925_v28, %v1320_v38 }
 0x613   : > { %1474 = vmatpush.bf16.msra.mxu1 %v1442_v52  ;;  %1487 = vmatpush.bf16.msra.mxu3 %v1443_v9 }
 0x614   : > { %v1325_v46 = vsel %vm1324_vm2, %v1925_v28, %v1321_v37 }
 0x616   : > { %1836 = vmatmul.msk.bf16.vlgmr.msra.gmra.mxu1 %vm1457_vm15, %v1452_v49  ;;  %1837 = vmatmul.msk.bf16.vlgmr.msra.gmra.mxu3 %vm1457_vm15, %v1452_v49 }
 0x693   : > { %v1476_v39 = vpop.f32.mrf.mxu1 }
 0x694   : > { %v1477_v16 = vadd.f32 %v1476_v39, %v1455_v53 }
 0x699   : > { %v1489_v54 = vpop.f32.mrf.mxu3 }
 0x69a   : > { %v1490_v4 = vadd.f32 %v1489_v54, %v1455_v53 }
 0x69b   : > { %v1478_v15 = vpop.f32.mrf.mxu1 }
 0x69c   : > { %v1493_v10 = vadd.f32 %v1490_v4, %v1477_v16 }
 0x69e   : > { %1494 = vadd.xlane.f32.xlu2 %v1493_v10  ;;  %v1951_v10 = vmov 4  }
 0x6a1   : > { %v1491_v17 = vpop.f32.mrf.mxu3 }
 0x711   : > { %v1495_v30 = vpop.xlane.xlu2 %1494 }
 0x712   : > { %v1509_v31 = vrot.slane %v1495_v30, 4  ;;  %v1496_v25 = vsel %vm1176_vm10, %v1495_v30, 0.0 }
 0x713   : > { %1497 = vadd.xlane.f32.xlu0 %v1496_v25  ;;  %v1952_v25 = vmov 5  }
 0x714   : > { %v1511_v0 = vsel %vm1176_vm10, %v1509_v31, 0.0 }
 0x715   : > { %1512 = vadd.xlane.f32.xlu1 %v1511_v0 }
 0x786   : > { %v1498_v29 = vpop.xlane.xlu0 %1497 }
 0x787   : > { %v1499_v45 = vrot.slane %v1498_v29, 4 }
 0x788   : > { %v1513_v2 = vpop.xlane.xlu1 %1512 }
 0x789   : > { %v1500_v8 = vadd.f32 %v1499_v45, %v1498_v29  ;;  %v1514_v48 = vrot.slane %v1513_v2, 4 }
 0x78b   : > { %v1501_v14 = vrot.slane %v1500_v8, 2  ;;  %v1515_v13 = vadd.f32 %v1514_v48, %v1513_v2 }
 0x78d   : > { %v1516_v33 = vrot.slane %v1515_v13, 2  ;;  %v1502_v7 = vadd.f32 %v1501_v14, %v1500_v8 }
 0x78f   : > { %v1503_v23 = vrot.slane %v1502_v7, 1  ;;  %v1517_v43 = vadd.f32 %v1516_v33, %v1515_v13 }
 0x791   : > { %v1504_v44 = vadd.f32 %v1503_v23, %v1502_v7  ;;  %v1518_v12 = vrot.slane %v1517_v43, 1  ;;  %v1953_v7 = vmov 6  }
 0x793   : > { %1862 = vpush %v1504_v44  ;;  %v1519_v56 = vadd.f32 %v1518_v12, %v1517_v43 }
 0x795   : > { %1864 = vpush %v1519_v56 }
 0x7c4   : > { %s1863_s11 = spop %1862 }
 0x7c5   : > { %v1506_v61 = vstv %s1863_s11 }
 0x7c6   : > { %s1865_s12 = spop %1864  ;;  %v1507_v32 = vmul.f32 0.0009765625, %v1506_v61 }
 0x7c7   : > { %v1521_v22 = vstv %s1865_s12 }
 0x7c8   : > { %v1522_v3 = vmul.f32 0.0009765625, %v1521_v22 }
 0x7ca   : > { %v1523_v18 = vsel %vm1231_vm11, %v1507_v32, %v1522_v3 }
 0x7cb   : > { %1526 = vperm.xlu2 %1903, %v1523_v18  }
 0x7d3   : > { %1911 = vset.pattern.permute.xlu2 %v1949_v62 }
 0x7d4   : > { %1351 = vperm.xlu2 %1911, %v2591_v35  }
 0x7dc   : > { %1912 = vset.pattern.permute.xlu2 %v1951_v10 }
 0x7dd   : > { %1583 = vperm.xlu2 %1912, %v2591_v35  }
 0x7e5   : > { %1914 = vset.pattern.permute.xlu2 %v1952_v25 }
 0x7e6   : > { %1589 = vperm.xlu2 %1914, %v2591_v35  }
 0x7ee   : > { %1916 = vset.pattern.permute.xlu2 %v1947_v6 }
 0x825   : > { %v1527_v24 = vpop.permute.xlu2 %1526 }
 0x826   : > { %v2798_v59 = vsub.f32 %v1477_v16, %v1527_v24  ;;  %v2800_v60 = vsub.f32 %v1490_v4, %v1527_v24 }
 0x828   : > { %v1531_v26 = vmul.f32 %v2798_v59, %v2798_v59  ;;  %v1532_v19 = vmul.f32 %v2800_v60, %v2800_v60 }
 0x82a   : > { %v1533_v40 = vadd.f32 %v1532_v19, %v1531_v26 }
 0x82c   : > { %1534 = vadd.xlane.f32.xlu0 %v1533_v40 }
 0x82e   : > { %v1352_v23 = vpop.permute.xlu2 %1351 }
 0x837   : > { %v1584_v44 = vpop.permute.xlu2 %1583 }
 0x840   : > { %v1590_v24 = vpop.permute.xlu2 %1589 }
 0x89f   : > { %v1535_v42 = vpop.xlane.xlu0 %1534 }
 0x8a0   : > { %v1549_v62 = vrot.slane %v1535_v42, 4  ;;  %v1536_v58 = vsel %vm1176_vm10, %v1535_v42, 0.0 }
 0x8a1   : > { %1537 = vadd.xlane.f32.xlu1 %v1536_v58 }
 0x8a2   : > { %v1551_v34 = vsel %vm1176_vm10, %v1549_v62, 0.0 }
 0x8a3   : > { %1552 = vadd.xlane.f32.xlu0 %v1551_v34 }
 0x8ba   : > { %1338 = vperm.xlu1 %1909, %v1325_v46  }
 0x8c2   : > { %1913 = vset.pattern.permute.xlu1 %v1948_v1 }
 0x8c3   : > { %1363 = vperm.xlu1 %1913, %v2591_v35  }
 0x8cb   : > { %1915 = vset.pattern.permute.xlu1 %v1953_v7 }
 0x8cc   : > { %1600 = vperm.xlu1 %1915, %v2591_v35  }
 0x914   : > { %v1538_v57 = vpop.xlane.xlu1 %1537 }
 0x915   : > { %v1539_v21 = vrot.slane %v1538_v57, 4 }
 0x916   : > { %v1553_v27 = vpop.xlane.xlu0 %1552 }
 0x917   : > { %v1540_v50 = vadd.f32 %v1539_v21, %v1538_v57  ;;  %v1554_v51 = vrot.slane %v1553_v27, 4 }
 0x919   : > { %v1541_v52 = vrot.slane %v1540_v50, 2  ;;  %v1555_v9 = vadd.f32 %v1554_v51, %v1553_v27 }
 0x91b   : > { %v1556_v49 = vrot.slane %v1555_v9, 2  ;;  %v1542_v39 = vadd.f32 %v1541_v52, %v1540_v50 }
 0x91d   : > { %v1543_v53 = vrot.slane %v1542_v39, 1  ;;  %v1557_v16 = vadd.f32 %v1556_v49, %v1555_v9 }
 0x91f   : > { %v1544_v54 = vadd.f32 %v1543_v53, %v1542_v39  ;;  %v1558_v4 = vrot.slane %v1557_v16, 1 }
 0x921   : > { %1866 = vpush %v1544_v54  ;;  %v1559_v15 = vadd.f32 %v1558_v4, %v1557_v16 }
 0x923   : > { %1868 = vpush %v1559_v15 }
 0x92c   : > { %v1339_v43 = vpop.permute.xlu1 %1338 }
 0x92d   : > { %v1346_v6 = vmul.f32 %v1339_v43, %v2688_v20  ;;  %v1347_v12 = vmul.f32 %v1339_v43, %v2691_v55 }
 0x92f   : > { %v1358_v22 = vmul.f32 %v1352_v23, %v1346_v6  ;;  %v1359_v32 = vmul.f32 %v1352_v23, %v1347_v12 }
 0x935   : > { %v1364_v56 = vpop.permute.xlu1 %1363 }
 0x936   : > { %v1370_v26 = vadd.f32 %v1364_v56, %v1358_v22  ;;  %v1371_v19 = vadd.f32 %v1364_v56, %v1359_v32 }
 0x938   : > { %v1374_v62 = vmax.f32 %v1370_v26, 0.0  ;;  %v1375_v58 = vmax.f32 %v1371_v19, 0.0 }
 0x952   : > { %s1867_s13 = spop %1866 }
 0x953   : > { %v1546_v1 = vstv %s1867_s13 }
 0x954   : > { %s1869_s14 = spop %1868  ;;  %v1547_v30 = vmul.f32 0.0009765625, %v1546_v1 }
 0x955   : > { %v1561_v17 = vstv %s1869_s14 }
 0x956   : > { %v1562_v31 = vmul.f32 0.0009765625, %v1561_v17 }
 0x958   : > { %v1563_v0 = vsel %vm1231_vm11, %v1547_v30, %v1562_v31 }
 0x959   : > { %v1564_v29 = vadd.f32 1e-05, %v1563_v0 }
 0x95b   : > { %1926 = vrsqrt.f32 %v1564_v29  ;;  %vm1571_vm4 = vweird.f32 %v1564_v29 }
 0x961   : > { %v1927_v45 = vpop.eup %1926 }
 0x962   : > { %v1566_v2 = vmul.f32 %v1927_v45, %v1564_v29  ;;  %vm1572_vm3 = vweird.f32 %v1927_v45 }
 0x963   : > { %vm1573_vm5 = vmor %vm1571_vm4, %vm1572_vm3 }
 0x964   : > { %v1567_v8 = vmul.f32 %v1927_v45, %v1566_v2 }
 0x966   : > { %v1568_v48 = vmul.f32 0.5, %v1567_v8 }
 0x968   : > { %v1569_v14 = vsub.f32 1.5, %v1568_v48 }
 0x96a   : > { %v1570_v13 = vmul.f32 %v1927_v45, %v1569_v14 }
 0x96c   : > { %v1574_v33 = vsel %vm1573_vm5, %v1927_v45, %v1570_v13 }
 0x96d   : > { %1577 = vperm.xlu0 %1910, %v1574_v33  }
 0x9df   : > { %v1578_v61 = vpop.permute.xlu0 %1577 }
 0x9e0   : > { %v1580_v3 = vmul.f32 %v1578_v61, %v2798_v59  ;;  %v1581_v18 = vmul.f32 %v1578_v61, %v2800_v60  ;;  %v1598_v59 = vld [vmem:[%s2855_s6] sm:$0x3]  ;;  %v1601_v60 = vpop.permute.xlu1 %1600 }
 0x9e2   : > { %v1586_v40 = vmul.f32 %v1584_v44, %v1580_v3  ;;  %v1587_v5 = vmul.f32 %v1584_v44, %v1581_v18 }
 0x9e4   : > { %v1592_v35 = vadd.f32 %v1590_v24, %v1586_v40  ;;  %v1593_v42 = vadd.f32 %v1590_v24, %v1587_v5 }
 0x9e6   : > { %v1594_v20 = vmax.f32 %v1592_v35, 0.0  ;;  %v1595_v28 = vmax.f32 %v1593_v42, 0.0 }
 0x9e8   : > { %v1596_v55 = vpack.c.bf16 %v1594_v20, %v1374_v62  ;;  %v1597_v34 = vpack.c.bf16 %v1595_v28, %v1375_v58 }
 0x9ea   : > { %1613 = vmatpush.bf16.msrb.mxu1 %v1596_v55  ;;  %1626 = vmatpush.bf16.msrb.mxu3 %v1597_v34  ;;  %v1954_v55 = vmov 7   ;;  %v1955_v34 = vmov 8  }
 0x9eb   : > { %1917 = vset.pattern.permute.xlu1 %v1954_v55 }
 0x9ed   : > { %1839 = vmatmul.msk.bf16.vlgmr.msrb.gmra.mxu3 %vm1110_vm9, %v1598_v59  ;;  %1838 = vmatmul.msk.bf16.vlgmr.msrb.gmra.mxu1 %vm1110_vm9, %v1598_v59  ;;  %v1930_v59 = vld [vmem:[%s2856_s7] sm:$0xff] }
 0xa6a   : > { %v1615_v11 = vpop.f32.mrf.mxu1 }
 0xa6b   : > { %v1616_v36 = vadd.f32 %v1615_v11, %v1601_v60 }
 0xa6d   : > { %v1632_v37 = vsel %vm1231_vm11, %v1616_v36, 0.0 }
 0xa70   : > { %v1628_v47 = vpop.f32.mrf.mxu3 }
 0xa71   : > { %v1629_v38 = vadd.f32 %v1628_v47, %v1601_v60 }
 0xa72   : > { %v1617_v46 = vpop.f32.mrf.mxu1 }
 0xa73   : > { %v1633_v57 = vsel %vm1231_vm11, %v1629_v38, 0.0 }
 0xa74   : > { %v1634_v21 = vadd.f32 %v1633_v57, %v1632_v37 }
 0xa76   : > { %1635 = vadd.xlane.f32.xlu2 %v1634_v21 }
 0xa78   : > { %v1630_v27 = vpop.f32.mrf.mxu3 }
 0xae9   : > { %v1636_v50 = vpop.xlane.xlu2 %1635 }
 0xaea   : > { %v1651_v51 = vrot.slane %v1636_v50, 2  ;;  %v1638_v52 = vsel %vm1637_vm6, %v1636_v50, 0.0 }
 0xaeb   : > { %1639 = vadd.xlane.f32.xlu1 %v1638_v52 }
 0xaec   : > { %v1653_v9 = vsel %vm1637_vm6, %v1651_v51, 0.0 }
 0xaed   : > { %1654 = vadd.xlane.f32.xlu0 %v1653_v9 }
 0xb5e   : > { %v1640_v49 = vpop.xlane.xlu1 %1639 }
 0xb5f   : > { %v1641_v39 = vrot.slane %v1640_v49, 4 }
 0xb60   : > { %v1655_v53 = vpop.xlane.xlu0 %1654 }
 0xb61   : > { %v1656_v16 = vrot.slane %v1655_v53, 4  ;;  %v1642_v54 = vadd.f32 %v1641_v39, %v1640_v49 }
 0xb63   : > { %v1657_v4 = vadd.f32 %v1656_v16, %v1655_v53  ;;  %v1643_v15 = vrot.slane %v1642_v54, 2 }
 0xb65   : > { %v1658_v10 = vrot.slane %v1657_v4, 2  ;;  %v1644_v1 = vadd.f32 %v1643_v15, %v1642_v54 }
 0xb67   : > { %v1645_v17 = vrot.slane %v1644_v1, 1  ;;  %v1659_v30 = vadd.f32 %v1658_v10, %v1657_v4 }
 0xb69   : > { %v1646_v31 = vadd.f32 %v1645_v17, %v1644_v1  ;;  %v1660_v25 = vrot.slane %v1659_v30, 1 }
 0xb6b   : > { %1870 = vpush %v1646_v31  ;;  %v1661_v0 = vadd.f32 %v1660_v25, %v1659_v30 }
 0xb6d   : > { %1872 = vpush %v1661_v0 }
 0xb9c   : > { %s1871_s25 = spop %1870 }
 0xb9d   : > { %v1648_v29 = vstv %s1871_s25 }
 0xb9e   : > { %s1873_s29 = spop %1872  ;;  %v1649_v2 = vmul.f32 0.001953125, %v1648_v29 }
 0xb9f   : > { %v1663_v45 = vstv %s1873_s29 }
 0xba0   : > { %v1664_v8 = vmul.f32 0.001953125, %v1663_v45 }
 0xba2   : > { %v1666_v48 = vsel %vm1665_vm7, %v1649_v2, %v1664_v8 }
 0xba3   : > { %1669 = vperm.xlu2 %1916, %v1666_v48  }
 0xbab   : > { %1918 = vset.pattern.permute.xlu2 %v1955_v34 }
 0xbac   : > { %1734 = vperm.xlu2 %1918, %v1930_v59  }
 0xbfd   : > { %v1670_v14 = vpop.permute.xlu2 %1669 }
 0xbfe   : > { %v1672_v13 = vsub.f32 %v1616_v36, %v1670_v14  ;;  %v1673_v33 = vsub.f32 %v1629_v38, %v1670_v14 }
 0xc00   : > { %v1674_v7 = vmul.f32 %v1672_v13, %v1672_v13  ;;  %v1675_v23 = vmul.f32 %v1673_v33, %v1673_v33 }
 0xc02   : > { %v1676_v43 = vsel %vm1231_vm11, %v1674_v7, 0.0  ;;  %v1677_v44 = vsel %vm1231_vm11, %v1675_v23, 0.0 }
 0xc03   : > { %v1678_v6 = vadd.f32 %v1677_v44, %v1676_v43 }
 0xc05   : > { %1679 = vadd.xlane.f32.xlu1 %v1678_v6 }
 0xc06   : > { %v1735_v16 = vpop.permute.xlu2 %1734 }
 0xc78   : > { %v1680_v12 = vpop.xlane.xlu1 %1679 }
 0xc79   : > { %v1694_v56 = vrot.slane %v1680_v12, 2  ;;  %v1681_v61 = vsel %vm1637_vm6, %v1680_v12, 0.0 }
 0xc7a   : > { %1682 = vadd.xlane.f32.xlu0 %v1681_v61 }
 0xc7b   : > { %v1696_v22 = vsel %vm1637_vm6, %v1694_v56, 0.0 }
 0xc7c   : > { %1697 = vadd.xlane.f32.xlu1 %v1696_v22 }
 0xc95   : > { %1728 = vperm.xlu1 %1917, %v1930_v59  }
 0xced   : > { %v1683_v32 = vpop.xlane.xlu0 %1682 }
 0xcee   : > { %v1684_v3 = vrot.slane %v1683_v32, 4 }
 0xcef   : > { %v1698_v18 = vpop.xlane.xlu1 %1697 }
 0xcf0   : > { %v1685_v24 = vadd.f32 %v1684_v3, %v1683_v32  ;;  %v1699_v26 = vrot.slane %v1698_v18, 4 }
 0xcf2   : > { %v1686_v19 = vrot.slane %v1685_v24, 2  ;;  %v1700_v40 = vadd.f32 %v1699_v26, %v1698_v18 }
 0xcf4   : > { %v1701_v5 = vrot.slane %v1700_v40, 2  ;;  %v1687_v35 = vadd.f32 %v1686_v19, %v1685_v24 }
 0xcf6   : > { %v1688_v42 = vrot.slane %v1687_v35, 1  ;;  %v1702_v62 = vadd.f32 %v1701_v5, %v1700_v40 }
 0xcf8   : > { %v1689_v58 = vadd.f32 %v1688_v42, %v1687_v35  ;;  %v1703_v20 = vrot.slane %v1702_v62, 1 }
 0xcfa   : > { %1874 = vpush %v1689_v58  ;;  %v1704_v28 = vadd.f32 %v1703_v20, %v1702_v62 }
 0xcfc   : > { %1876 = vpush %v1704_v28 }
 0xd07   : > { %v1729_v49 = vpop.permute.xlu1 %1728 }
 0xd2b   : > { %s1875_s10 = spop %1874 }
 0xd2c   : > { %v1691_v60 = vstv %s1875_s10 }
 0xd2d   : > { %s1877_s17 = spop %1876  ;;  %v1692_v36 = vmul.f32 0.001953125, %v1691_v60 }
 0xd2e   : > { %v1706_v11 = vstv %s1877_s17 }
 0xd2f   : > { %v1707_v47 = vmul.f32 0.001953125, %v1706_v11 }
 0xd31   : > { %v1708_v38 = vsel %vm1665_vm7, %v1692_v36, %v1707_v47 }
 0xd32   : > { %v1709_v37 = vadd.f32 1e-05, %v1708_v38 }
 0xd34   : > { %1928 = vrsqrt.f32 %v1709_v37  ;;  %vm1716_vm9 = vweird.f32 %v1709_v37 }
 0xd3a   : > { %v1929_v46 = vpop.eup %1928 }
 0xd3b   : > { %v1711_v57 = vmul.f32 %v1929_v46, %v1709_v37  ;;  %vm1717_vm8 = vweird.f32 %v1929_v46 }
 0xd3c   : > { %vm1718_vm10 = vmor %vm1716_vm9, %vm1717_vm8 }
 0xd3d   : > { %v1712_v21 = vmul.f32 %v1929_v46, %v1711_v57 }
 0xd3f   : > { %v1713_v27 = vmul.f32 0.5, %v1712_v21 }
 0xd41   : > { %v1714_v50 = vsub.f32 1.5, %v1713_v27 }
 0xd43   : > { %v1715_v51 = vmul.f32 %v1929_v46, %v1714_v50 }
 0xd45   : > { %v1719_v52 = vsel %vm1718_vm10, %v1929_v46, %v1715_v51 }
 0xd46   : > { %1722 = vperm.xlu0 %1910, %v1719_v52  }
 0xd4e   : > { %1919 = vset.pattern.permute.xlu0 %v1955_v34 }
 0xdb8   : > { %v1723_v9 = vpop.permute.xlu0 %1722 }
 0xdb9   : > { %v1725_v39 = vmul.f32 %v1723_v9, %v1672_v13  ;;  %v1726_v53 = vmul.f32 %v1723_v9, %v1673_v33 }
 0xdbb   : > { %v1731_v54 = vmul.f32 %v1729_v49, %v1725_v39  ;;  %v1732_v4 = vmul.f32 %v1729_v49, %v1726_v53 }
 0xdbd   : > { %v1737_v15 = vadd.f32 %v1735_v16, %v1731_v54  ;;  %v1738_v10 = vadd.f32 %v1735_v16, %v1732_v4 }
 0xdbf   : > { %v1739_v1 = vmax.f32 %v1737_v15, 0.0  ;;  %v1740_v17 = vmax.f32 %v1738_v10, 0.0 }
 0xdc1   : > { %v1742_v30 = vadd.f32 %v1740_v17, %v2378_v63  ;;  %v1741_v31 = vadd.f32 %v1739_v1, %v2364_v41 }
 0xdc3   : > { %v1745_v25 = vrot.slane %v1742_v30, 4 }
 0xdc5   : > { %v1746_v0 = vsel %vm1231_vm11, %v1741_v31, %v1745_v25 }
 0xdc6   : > { %1748 = vst [vmem:[%s322_s21] sm:$0xff] %v1746_v0 }
 0xdc7 PF: > { %s18_s27 = sadd.s32 1, %s1937_s27  }
 0xdc8   : > { %p15_p4 = scmp.ge.s32.totalorder %s18_s27, 4  }
 0xdca   :  { %17 = sbr.rel (!%p15_p4) target bundleno = 1 (0x1), region = 85 }

</bundles_post_ra>
